<compile_context>
chip_gen: v7x
topology: tpu7x:2x2x1
jax: 0.10.0
libtpu: 0.0.40
codegen_flags: <defaults>
</compile_context>

<pallas_src>
import functools

import jax
import jax.numpy as jnp
from jax.experimental import pallas as pl
from jax.experimental.pallas import tpu as pltpu


# ----------------------------------------------------------------------------
# Pallas kernel: full forward pass for a Bt-sized batch tile per grid step.
# ----------------------------------------------------------------------------
def _gazelle_kernel(
    audio_ref, text_ref, visual_ref,
    Wa, Wt, Wv, Wqkv, Wo, W1, W2, Wh1, Wh2,
    vecs, bqkv, b1, bh1, bh2,
    out_ref,
    *, d_gaze, hh,
):
    Bt = audio_ref.shape[0]
    D = Wa.shape[1]

    def matmul(x, W):
        # contract last dim of x with dim 0 of W; f32 accumulate on the MXU
        return jax.lax.dot_general(
            x, W, (((x.ndim - 1,), (0,)), ((), ())),
            preferred_element_type=jnp.float32)

    def layernorm(y, g, b, eps=1e-5):
        mu = jnp.mean(y, axis=-1, keepdims=True)
        var = jnp.mean((y - mu) ** 2, axis=-1, keepdims=True)
        return (y - mu) * jax.lax.rsqrt(var + eps) * g + b

    # packed (9, D) row-vectors: biases + LayerNorm params
    vrows = vecs[...]
    ba, bt_, bv = vrows[0:1], vrows[1:2], vrows[2:3]
    bo = vrows[3:4]
    ln1_g, ln1_b = vrows[4:5], vrows[5:6]
    b2 = vrows[6:7]
    ln2_g, ln2_b = vrows[7:8], vrows[8:9]

    # --- modality projections, batched (Bt, S_m, D_m) @ (D_m, D) ---
    pa = matmul(audio_ref[...], Wa[...]) + ba
    pt = matmul(text_ref[...], Wt[...]) + bt_
    pv = matmul(visual_ref[...], Wv[...]) + bv

    # token fusion: single axis-1 concat -> (Bt, S, D)
    x = jnp.concatenate([pa, pt, pv], axis=1)

    # --- fused Q/K/V projection: one MXU pass with N = 3*D ---
    qkv = matmul(x, Wqkv[...]) + bqkv[...]                 # (Bt, S, 3D)
    q = qkv[..., 0:D]
    k = qkv[..., D:2 * D]
    v = qkv[..., 2 * D:3 * D]

    # --- single-head self-attention, batched over the tile ---
    scale = 1.0 / jnp.sqrt(jnp.float32(D))
    sc = jnp.einsum("bqd,bkd->bqk", q, k,
                    preferred_element_type=jnp.float32) * scale
    sc = sc - jnp.max(sc, axis=-1, keepdims=True)
    pr = jnp.exp(sc)
    pr = pr * pl.reciprocal(jnp.sum(pr, axis=-1, keepdims=True), approx=True)
    ctx = jnp.einsum("bqk,bkd->bqd", pr, v,
                     preferred_element_type=jnp.float32)

    attn = matmul(ctx, Wo[...]) + bo
    x = layernorm(x + attn, ln1_g, ln1_b)

    # --- feed-forward ---
    h = jnp.maximum(matmul(x, W1[...]) + b1[...], 0.0)
    x = layernorm(x + matmul(h, W2[...]) + b2, ln2_g, ln2_b)

    # --- heads on the CLS token (token 0 of each batch element) ---
    cls = x[:, 0, :]                                       # (Bt, D)

    # fused first matmul: cls @ [Wg1 | Wc | 0pad]  (gaze hidden + inout logit)
    gz = matmul(cls, Wh1[...]) + bh1[...]                  # (Bt, head1_w)
    io = gz[:, d_gaze:d_gaze + 1]                          # inout logit, pre-ReLU
    g = jnp.maximum(gz, 0.0)                               # ReLU (padded rows of Wh2 are 0)
    z2 = matmul(g, Wh2[...]) + bh2[...]                    # (Bt, out_w)
    heat = jax.nn.sigmoid(z2)

    # single lane-dense output slab: cols [0,hh) = heatmap, col hh = inout.
    out_w = out_ref.shape[-1]
    col = jax.lax.broadcasted_iota(jnp.int32, (Bt, out_w), 1)
    slab = jnp.where(col < hh, heat,
                     jnp.where(col == hh,
                               jnp.broadcast_to(io, (Bt, out_w)), 0.0))
    out_ref[0] = slab


# ----------------------------------------------------------------------------
# Tiling heuristics.
# ----------------------------------------------------------------------------
def _num_tensorcores_per_chip():
    # v7x has 2 TensorCores per chip; v5e/v6e have 1.  Default to 1 if the
    # device kind cannot be determined.
    try:
        kind = jax.devices()[0].device_kind.lower()
        if "v7" in kind or "7x" in kind:
            return 2
    except Exception:
        pass
    return 1


def _pick_batch_tile(B, cores):
    # single-TC chips: whole batch per grid step (capped at 8) to amortize the
    # ~0.35us per-step pipeline overhead.  dual-TC chips: at least `cores`
    # grid steps so the "parallel" batch axis shards across both TensorCores.
    return min(8, max(1, -(-B // cores)))


# ----------------------------------------------------------------------------
# JAX wrapper.
# ----------------------------------------------------------------------------
@functools.partial(jax.jit, static_argnames=("heatmap_size",))
def multimodal_gazelle_forward(audio, text, visual, params, heatmap_size):
    B, Sa, Da = audio.shape
    _, St, Dt = text.shape
    _, Sv, Dv = visual.shape
    H = heatmap_size
    HH = H * H
    D = params["Wa"].shape[1]
    d_gaze = params["Wg1"].shape[1]

    cores = _num_tensorcores_per_chip()
    Bt = _pick_batch_tile(B, cores)
    Bp = -(-B // Bt) * Bt                      # pad batch to a multiple of Bt
    if Bp != B:
        pad = ((0, Bp - B), (0, 0), (0, 0))
        audio = jnp.pad(audio, pad)
        text = jnp.pad(text, pad)
        visual = jnp.pad(visual, pad)
    n_steps = Bp // Bt

    # --- packed / fused parameters (fewer DMA streams, lane-dense heads) ---
    Wqkv = jnp.concatenate([params["Wq"], params["Wk"], params["Wvv"]], axis=1)
    bqkv = jnp.concatenate([params["bq"], params["bk"], params["bvv"]], axis=1)
    vecs = jnp.concatenate(
        [params["ba"], params["bt"], params["bv"], params["bo"],
         params["ln1_g"], params["ln1_b"], params["b2"],
         params["ln2_g"], params["ln2_b"]], axis=0)        # (9, D)

    # head 1: cls @ [Wg1 | Wc | 0pad] — one MXU pass, padded to 128 lanes
    head1_w = max(128, -(-(d_gaze + 1) // 128) * 128)
    Wh1 = jnp.zeros((D, head1_w), jnp.float32)
    Wh1 = Wh1.at[:, :d_gaze].set(params["Wg1"])
    Wh1 = Wh1.at[:, d_gaze:d_gaze + 1].set(params["Wc"])
    bh1 = jnp.zeros((1, head1_w), jnp.float32)
    bh1 = bh1.at[:, :d_gaze].set(params["bg1"])
    bh1 = bh1.at[:, d_gaze:d_gaze + 1].set(params["bc"])

    # head 2 + output slab: heatmap in cols [0, HH), inout logit in col HH,
    # padded to a multiple of 128 lanes -> one unmasked store per grid step.
    out_w = max(128, -(-(HH + 1) // 128) * 128)
    Wh2 = jnp.zeros((head1_w, out_w), jnp.float32)
    Wh2 = Wh2.at[:d_gaze, :HH].set(params["Wg2"])
    bh2 = jnp.zeros((1, out_w), jnp.float32)
    bh2 = bh2.at[:, :HH].set(params["bg2"])

    plist = [
        params["Wa"], params["Wt"], params["Wv"], Wqkv, params["Wo"],
        params["W1"], params["W2"], Wh1, Wh2,
        vecs, bqkv, params["b1"], bh1, bh2,
    ]

    in_specs = [
        pl.BlockSpec((Bt, Sa, Da), lambda b: (b, 0, 0)),
        pl.BlockSpec((Bt, St, Dt), lambda b: (b, 0, 0)),
        pl.BlockSpec((Bt, Sv, Dv), lambda b: (b, 0, 0)),
    ] + [pl.BlockSpec(p.shape, lambda b: (0, 0)) for p in plist]

    # 3-D output so the block's last two dims equal the full array dims
    # (valid for any Bt, including Bt=1 on dual-TC chips).
    out_specs = pl.BlockSpec((1, Bt, out_w), lambda b: (b, 0, 0))
    out_shape = jax.ShapeDtypeStruct((n_steps, Bt, out_w), jnp.float32)

    kern = functools.partial(_gazelle_kernel, d_gaze=d_gaze, hh=HH)
    out = pl.pallas_call(
        kern,
        out_shape=out_shape,
        grid_spec=pltpu.PrefetchScalarGridSpec(
            num_scalar_prefetch=0,
            grid=(n_steps,),
            in_specs=in_specs,
            out_specs=out_specs,
        ),
        compiler_params=pltpu.CompilerParams(
            dimension_semantics=("parallel",)),
    )(audio, text, visual, *plist)

    out = out.reshape(Bp, out_w)[:B]
    heat = out[:, :HH].reshape(B, H, H)
    io = out[:, HH:HH + 1]
    return heat, io


# ----------------------------------------------------------------------------
# Pure-JAX reference (same math) for verification.
# ----------------------------------------------------------------------------
def reference_forward(audio, text, visual, p, heatmap_size):
    def lin(x, W, b):
        return x @ W + b

    def ln(y, g, b, eps=1e-5):
        mu = jnp.mean(y, axis=-1, keepdims=True)
        var = jnp.mean((y - mu) ** 2, axis=-1, keepdims=True)
        return (y - mu) / jnp.sqrt(var + eps) * g + b

    x = jnp.concatenate(
        [lin(audio, p["Wa"], p["ba"]),
         lin(text, p["Wt"], p["bt"]),
         lin(visual, p["Wv"], p["bv"])], axis=1)           # (B, S, D)

    q = lin(x, p["Wq"], p["bq"])
    k = lin(x, p["Wk"], p["bk"])
    vv = lin(x, p["Wvv"], p["bvv"])
    scale = 1.0 / jnp.sqrt(jnp.float32(q.shape[-1]))
    scores = jnp.einsum("bqd,bkd->bqk", q, k) * scale
    pr = jax.nn.softmax(scores, axis=-1)
    attn = lin(jnp.einsum("bqk,bkd->bqd", pr, vv), p["Wo"], p["bo"])
    x = ln(x + attn, p["ln1_g"], p["ln1_b"])
    h = jax.nn.relu(lin(x, p["W1"], p["b1"]))
    x = ln(x + lin(h, p["W2"], p["b2"]), p["ln2_g"], p["ln2_b"])

    cls = x[:, 0]                                          # (B, D)
    g = jax.nn.relu(cls @ p["Wg1"] + p["bg1"])
    heat = jax.nn.sigmoid(g @ p["Wg2"] + p["bg2"])
    B = cls.shape[0]
    heat = heat.reshape(B, heatmap_size, heatmap_size)
    io = cls @ p["Wc"] + p["bc"]
    return heat, io


# ----------------------------------------------------------------------------
# Deterministic parameter init.
# ----------------------------------------------------------------------------
def init_params(key, audio_dim, text_dim, visual_dim, d_model, heatmap_size,
                d_ff, d_gaze):
    shapes = {
        "Wa": (audio_dim, d_model), "ba": (1, d_model),
        "Wt": (text_dim, d_model), "bt": (1, d_model),
        "Wv": (visual_dim, d_model), "bv": (1, d_model),
        "Wq": (d_model, d_model), "bq": (1, d_model),
        "Wk": (d_model, d_model), "bk": (1, d_model),
        "Wvv": (d_model, d_model), "bvv": (1, d_model),
        "Wo": (d_model, d_model), "bo": (1, d_model),
        "ln1_g": (1, d_model), "ln1_b": (1, d_model),
        "W1": (d_model, d_ff), "b1": (1, d_ff),
        "W2": (d_ff, d_model), "b2": (1, d_model),
        "ln2_g": (1, d_model), "ln2_b": (1, d_model),
        "Wg1": (d_model, d_gaze), "bg1": (1, d_gaze),
        "Wg2": (d_gaze, heatmap_size * heatmap_size),
        "bg2": (1, heatmap_size * heatmap_size),
        "Wc": (d_model, 1), "bc": (1, 1),
    }
    params = {}
    keys = jax.random.split(key, len(shapes))
    for (name, shape), k in zip(shapes.items(), keys):
        if name.startswith("W"):
            params[name] = 0.05 * jax.random.normal(k, shape, jnp.float32)
        elif name.endswith("_g"):
            params[name] = jnp.ones(shape, jnp.float32)
        else:
            params[name] = jnp.zeros(shape, jnp.float32)
    return params


if __name__ == "__main__":
    # Small shapes consistent with the module's forward.
    B = 2
    audio_dim, text_dim, visual_dim = 16, 24, 32
    Sa, St, Sv = 8, 8, 8
    d_model = 32
    d_ff = 64
    d_gaze = 32
    heatmap_size = 8

    key = jax.random.PRNGKey(0)
    k_a, k_t, k_v, k_p = jax.random.split(key, 4)
    audio_feat = jax.random.normal(k_a, (B, Sa, audio_dim), jnp.float32)
    text_feat = jax.random.normal(k_t, (B, St, text_dim), jnp.float32)
    visual_feat = jax.random.normal(k_v, (B, Sv, visual_dim), jnp.float32)

    params = init_params(k_p, audio_dim, text_dim, visual_dim, d_model,
                         heatmap_size, d_ff, d_gaze)

    heat, inout = multimodal_gazelle_forward(
        audio_feat, text_feat, visual_feat, params,
        heatmap_size=heatmap_size)
    heat = jax.block_until_ready(heat)
    inout = jax.block_until_ready(inout)

    # Verify against a pure-JAX reference.
    heat_ref, inout_ref = reference_forward(
        audio_feat, text_feat, visual_feat, params, heatmap_size)
    assert heat.shape == (B, heatmap_size, heatmap_size)
    assert inout.shape == (B, 1)
    assert jnp.allclose(heat, heat_ref, rtol=1e-3, atol=1e-3)
    assert jnp.allclose(inout, inout_ref, rtol=1e-3, atol=1e-3)

    print("KERNEL_OK")
</pallas_src>

<mosaic_0001>
module attributes {stable_mosaic.version = 11 : i64} {
  func.func @_gazelle_kernel(%arg0: i32, %arg1: memref<2x8x16xf32, #tpu.memory_space<vmem>>, %arg2: memref<2x8x24xf32, #tpu.memory_space<vmem>>, %arg3: memref<2x8x32xf32, #tpu.memory_space<vmem>>, %arg4: memref<16x32xf32, #tpu.memory_space<vmem>>, %arg5: memref<24x32xf32, #tpu.memory_space<vmem>>, %arg6: memref<32x32xf32, #tpu.memory_space<vmem>>, %arg7: memref<32x96xf32, #tpu.memory_space<vmem>>, %arg8: memref<32x32xf32, #tpu.memory_space<vmem>>, %arg9: memref<32x64xf32, #tpu.memory_space<vmem>>, %arg10: memref<64x32xf32, #tpu.memory_space<vmem>>, %arg11: memref<32x128xf32, #tpu.memory_space<vmem>>, %arg12: memref<128x128xf32, #tpu.memory_space<vmem>>, %arg13: memref<9x32xf32, #tpu.memory_space<vmem>>, %arg14: memref<1x96xf32, #tpu.memory_space<vmem>>, %arg15: memref<1x64xf32, #tpu.memory_space<vmem>>, %arg16: memref<1x128xf32, #tpu.memory_space<vmem>>, %arg17: memref<1x128xf32, #tpu.memory_space<vmem>>, %arg18: memref<1x2x128xf32, #tpu.memory_space<vmem>>) attributes {dimension_semantics = [#tpu.dimension_semantics<parallel>], iteration_bounds = array<i64: 1>, scalar_prefetch = 0 : i64, scratch_operands = 0 : i64, tpu.core_type = #tpu.core_type<tc>, window_params = [{transform_indices = @transform_0, window_bounds = array<i64: 2, 8, 16>}, {transform_indices = @transform_1, window_bounds = array<i64: 2, 8, 24>}, {transform_indices = @transform_2, window_bounds = array<i64: 2, 8, 32>}, {pipeline_mode = #tpu.pipeline_mode<synchronous>, transform_indices = @transform_3, window_bounds = array<i64: 16, 32>}, {pipeline_mode = #tpu.pipeline_mode<synchronous>, transform_indices = @transform_4, window_bounds = array<i64: 24, 32>}, {pipeline_mode = #tpu.pipeline_mode<synchronous>, transform_indices = @transform_5, window_bounds = array<i64: 32, 32>}, {pipeline_mode = #tpu.pipeline_mode<synchronous>, transform_indices = @transform_6, window_bounds = array<i64: 32, 96>}, {pipeline_mode = #tpu.pipeline_mode<synchronous>, transform_indices = @transform_7, window_bounds = array<i64: 32, 32>}, {pipeline_mode = #tpu.pipeline_mode<synchronous>, transform_indices = @transform_8, window_bounds = array<i64: 32, 64>}, {pipeline_mode = #tpu.pipeline_mode<synchronous>, transform_indices = @transform_9, window_bounds = array<i64: 64, 32>}, {pipeline_mode = #tpu.pipeline_mode<synchronous>, transform_indices = @transform_10, window_bounds = array<i64: 32, 128>}, {pipeline_mode = #tpu.pipeline_mode<synchronous>, transform_indices = @transform_11, window_bounds = array<i64: 128, 128>}, {pipeline_mode = #tpu.pipeline_mode<synchronous>, transform_indices = @transform_12, window_bounds = array<i64: 9, 32>}, {pipeline_mode = #tpu.pipeline_mode<synchronous>, transform_indices = @transform_13, window_bounds = array<i64: 1, 96>}, {pipeline_mode = #tpu.pipeline_mode<synchronous>, transform_indices = @transform_14, window_bounds = array<i64: 1, 64>}, {pipeline_mode = #tpu.pipeline_mode<synchronous>, transform_indices = @transform_15, window_bounds = array<i64: 1, 128>}, {pipeline_mode = #tpu.pipeline_mode<synchronous>, transform_indices = @transform_16, window_bounds = array<i64: 1, 128>}, {transform_indices = @transform_17, window_bounds = array<i64: 1, 2, 128>}]} {
    %c0 = arith.constant 0 : index
    %c0_0 = arith.constant 0 : index
    %0 = vector.load %arg13[%c0, %c0_0] : memref<9x32xf32, #tpu.memory_space<vmem>>, vector<9x32xf32>
    %1 = vector.extract_strided_slice %0 {offsets = [0, 0], sizes = [1, 32], strides = [1, 1]} : vector<9x32xf32> to vector<1x32xf32>
    %2 = vector.extract_strided_slice %0 {offsets = [1, 0], sizes = [1, 32], strides = [1, 1]} : vector<9x32xf32> to vector<1x32xf32>
    %3 = vector.extract_strided_slice %0 {offsets = [2, 0], sizes = [1, 32], strides = [1, 1]} : vector<9x32xf32> to vector<1x32xf32>
    %4 = vector.extract_strided_slice %0 {offsets = [3, 0], sizes = [1, 32], strides = [1, 1]} : vector<9x32xf32> to vector<1x32xf32>
    %5 = vector.extract_strided_slice %0 {offsets = [4, 0], sizes = [1, 32], strides = [1, 1]} : vector<9x32xf32> to vector<1x32xf32>
    %6 = vector.extract_strided_slice %0 {offsets = [5, 0], sizes = [1, 32], strides = [1, 1]} : vector<9x32xf32> to vector<1x32xf32>
    %7 = vector.extract_strided_slice %0 {offsets = [6, 0], sizes = [1, 32], strides = [1, 1]} : vector<9x32xf32> to vector<1x32xf32>
    %8 = vector.extract_strided_slice %0 {offsets = [7, 0], sizes = [1, 32], strides = [1, 1]} : vector<9x32xf32> to vector<1x32xf32>
    %9 = vector.extract_strided_slice %0 {offsets = [8, 0], sizes = [1, 32], strides = [1, 1]} : vector<9x32xf32> to vector<1x32xf32>
    %c0_1 = arith.constant 0 : index
    %c0_2 = arith.constant 0 : index
    %c0_3 = arith.constant 0 : index
    %10 = vector.load %arg1[%c0_1, %c0_2, %c0_3] : memref<2x8x16xf32, #tpu.memory_space<vmem>>, vector<2x8x16xf32>
    %c0_4 = arith.constant 0 : index
    %c0_5 = arith.constant 0 : index
    %11 = vector.load %arg4[%c0_4, %c0_5] : memref<16x32xf32, #tpu.memory_space<vmem>>, vector<16x32xf32>
    %cst = arith.constant dense<0.000000e+00> : vector<2x8x32xf32>
    %12 = tpu.matmul %10, %11, %cst {dimension_numbers = #tpu.dot_dimension_numbers<[2], [0], [0, 1], [1], [0, 0, 0, 1, 1, 1], [], []>} : vector<2x8x16xf32>, vector<16x32xf32>, vector<2x8x32xf32> -> vector<2x8x32xf32>
    %13 = vector.shape_cast %1 : vector<1x32xf32> to vector<1x1x32xf32>
    %14 = vector.broadcast %13 : vector<1x1x32xf32> to vector<2x8x32xf32>
    %15 = arith.addf %12, %14 : vector<2x8x32xf32>
    %c0_6 = arith.constant 0 : index
    %c0_7 = arith.constant 0 : index
    %c0_8 = arith.constant 0 : index
    %16 = vector.load %arg2[%c0_6, %c0_7, %c0_8] : memref<2x8x24xf32, #tpu.memory_space<vmem>>, vector<2x8x24xf32>
    %c0_9 = arith.constant 0 : index
    %c0_10 = arith.constant 0 : index
    %17 = vector.load %arg5[%c0_9, %c0_10] : memref<24x32xf32, #tpu.memory_space<vmem>>, vector<24x32xf32>
    %cst_11 = arith.constant dense<0.000000e+00> : vector<2x8x32xf32>
    %18 = tpu.matmul %16, %17, %cst_11 {dimension_numbers = #tpu.dot_dimension_numbers<[2], [0], [0, 1], [1], [0, 0, 0, 1, 1, 1], [], []>} : vector<2x8x24xf32>, vector<24x32xf32>, vector<2x8x32xf32> -> vector<2x8x32xf32>
    %19 = vector.shape_cast %2 : vector<1x32xf32> to vector<1x1x32xf32>
    %20 = vector.broadcast %19 : vector<1x1x32xf32> to vector<2x8x32xf32>
    %21 = arith.addf %18, %20 : vector<2x8x32xf32>
    %c0_12 = arith.constant 0 : index
    %c0_13 = arith.constant 0 : index
    %c0_14 = arith.constant 0 : index
    %22 = vector.load %arg3[%c0_12, %c0_13, %c0_14] : memref<2x8x32xf32, #tpu.memory_space<vmem>>, vector<2x8x32xf32>
    %c0_15 = arith.constant 0 : index
    %c0_16 = arith.constant 0 : index
    %23 = vector.load %arg6[%c0_15, %c0_16] : memref<32x32xf32, #tpu.memory_space<vmem>>, vector<32x32xf32>
    %cst_17 = arith.constant dense<0.000000e+00> : vector<2x8x32xf32>
    %24 = tpu.matmul %22, %23, %cst_17 {dimension_numbers = #tpu.dot_dimension_numbers<[2], [0], [0, 1], [1], [0, 0, 0, 1, 1, 1], [], []>} : vector<2x8x32xf32>, vector<32x32xf32>, vector<2x8x32xf32> -> vector<2x8x32xf32>
    %25 = vector.shape_cast %3 : vector<1x32xf32> to vector<1x1x32xf32>
    %26 = vector.broadcast %25 : vector<1x1x32xf32> to vector<2x8x32xf32>
    %27 = arith.addf %24, %26 : vector<2x8x32xf32>
    %28 = tpu.concatenate %15, %21, %27 in 1 : vector<2x8x32xf32>, vector<2x8x32xf32>, vector<2x8x32xf32> -> vector<2x24x32xf32>
    %c0_18 = arith.constant 0 : index
    %c0_19 = arith.constant 0 : index
    %29 = vector.load %arg7[%c0_18, %c0_19] : memref<32x96xf32, #tpu.memory_space<vmem>>, vector<32x96xf32>
    %cst_20 = arith.constant dense<0.000000e+00> : vector<2x24x96xf32>
    %30 = tpu.matmul %28, %29, %cst_20 {dimension_numbers = #tpu.dot_dimension_numbers<[2], [0], [0, 1], [1], [0, 0, 0, 1, 1, 1], [], []>} : vector<2x24x32xf32>, vector<32x96xf32>, vector<2x24x96xf32> -> vector<2x24x96xf32>
    %c0_21 = arith.constant 0 : index
    %c0_22 = arith.constant 0 : index
    %31 = vector.load %arg14[%c0_21, %c0_22] : memref<1x96xf32, #tpu.memory_space<vmem>>, vector<1x96xf32>
    %32 = vector.shape_cast %31 : vector<1x96xf32> to vector<1x1x96xf32>
    %33 = vector.broadcast %32 : vector<1x1x96xf32> to vector<2x24x96xf32>
    %34 = arith.addf %30, %33 : vector<2x24x96xf32>
    %35 = vector.extract_strided_slice %34 {offsets = [0, 0, 0], sizes = [2, 24, 32], strides = [1, 1, 1]} : vector<2x24x96xf32> to vector<2x24x32xf32>
    %36 = vector.extract_strided_slice %34 {offsets = [0, 0, 32], sizes = [2, 24, 32], strides = [1, 1, 1]} : vector<2x24x96xf32> to vector<2x24x32xf32>
    %37 = vector.extract_strided_slice %34 {offsets = [0, 0, 64], sizes = [2, 24, 32], strides = [1, 1, 1]} : vector<2x24x96xf32> to vector<2x24x32xf32>
    %cst_23 = arith.constant 3.200000e+01 : f32
    %38 = math.sqrt %cst_23 : f32
    %cst_24 = arith.constant 1.000000e+00 : f32
    %39 = arith.divf %cst_24, %38 : f32
    "tpu.trace_start"() <{level = 10 : i32, message = "bqd,bkd->bqk"}> : () -> ()
    %cst_25 = arith.constant dense<0.000000e+00> : vector<2x24x24xf32>
    %40 = tpu.matmul %35, %36, %cst_25 {dimension_numbers = #tpu.dot_dimension_numbers<[2], [2], [1], [1], [0, 0, 0, 1, 1, 1], [0], [0]>} : vector<2x24x32xf32>, vector<2x24x32xf32>, vector<2x24x24xf32> -> vector<2x24x24xf32>
    "tpu.trace_stop"() : () -> ()
    %41 = vector.broadcast %39 : f32 to vector<2x24x24xf32>
    %42 = arith.mulf %40, %41 : vector<2x24x24xf32>
    %cst_26 = arith.constant dense<0xFF800000> : vector<2x24xf32>
    %43 = vector.multi_reduction <maximumf>, %42, %cst_26 [2] : vector<2x24x24xf32> to vector<2x24xf32>
    %44 = vector.shape_cast %43 : vector<2x24xf32> to vector<2x24x1xf32>
    %45 = vector.broadcast %44 : vector<2x24x1xf32> to vector<2x24x24xf32>
    %46 = arith.subf %42, %45 : vector<2x24x24xf32>
    %47 = math.exp %46 : vector<2x24x24xf32>
    %cst_27 = arith.constant dense<0.000000e+00> : vector<2x24xf32>
    %48 = vector.multi_reduction <add>, %47, %cst_27 [2] : vector<2x24x24xf32> to vector<2x24xf32>
    %49 = vector.shape_cast %48 : vector<2x24xf32> to vector<2x24x1xf32>
    %50 = tpu.reciprocal %49 {approx = true} : vector<2x24x1xf32> -> vector<2x24x1xf32>
    %51 = vector.broadcast %50 : vector<2x24x1xf32> to vector<2x24x24xf32>
    %52 = arith.mulf %47, %51 : vector<2x24x24xf32>
    "tpu.trace_start"() <{level = 10 : i32, message = "bqk,bkd->bqd"}> : () -> ()
    %cst_28 = arith.constant dense<0.000000e+00> : vector<2x24x32xf32>
    %53 = tpu.matmul %52, %37, %cst_28 {dimension_numbers = #tpu.dot_dimension_numbers<[2], [1], [1], [2], [0, 0, 0, 1, 1, 2], [0], [0]>} : vector<2x24x24xf32>, vector<2x24x32xf32>, vector<2x24x32xf32> -> vector<2x24x32xf32>
    "tpu.trace_stop"() : () -> ()
    %c0_29 = arith.constant 0 : index
    %c0_30 = arith.constant 0 : index
    %54 = vector.load %arg8[%c0_29, %c0_30] : memref<32x32xf32, #tpu.memory_space<vmem>>, vector<32x32xf32>
    %cst_31 = arith.constant dense<0.000000e+00> : vector<2x24x32xf32>
    %55 = tpu.matmul %53, %54, %cst_31 {dimension_numbers = #tpu.dot_dimension_numbers<[2], [0], [0, 1], [1], [0, 0, 0, 1, 1, 1], [], []>} : vector<2x24x32xf32>, vector<32x32xf32>, vector<2x24x32xf32> -> vector<2x24x32xf32>
    %56 = vector.shape_cast %4 : vector<1x32xf32> to vector<1x1x32xf32>
    %57 = vector.broadcast %56 : vector<1x1x32xf32> to vector<2x24x32xf32>
    %58 = arith.addf %55, %57 : vector<2x24x32xf32>
    %59 = arith.addf %28, %58 : vector<2x24x32xf32>
    %cst_32 = arith.constant dense<0.000000e+00> : vector<2x24xf32>
    %60 = vector.multi_reduction <add>, %59, %cst_32 [2] : vector<2x24x32xf32> to vector<2x24xf32>
    %61 = vector.shape_cast %60 : vector<2x24xf32> to vector<2x24x1xf32>
    %cst_33 = arith.constant 3.200000e+01 : f32
    %62 = vector.broadcast %cst_33 : f32 to vector<2x24x1xf32>
    %63 = arith.divf %61, %62 : vector<2x24x1xf32>
    %64 = vector.broadcast %63 : vector<2x24x1xf32> to vector<2x24x32xf32>
    %65 = arith.subf %59, %64 : vector<2x24x32xf32>
    %66 = arith.mulf %65, %65 : vector<2x24x32xf32>
    %cst_34 = arith.constant dense<0.000000e+00> : vector<2x24xf32>
    %67 = vector.multi_reduction <add>, %66, %cst_34 [2] : vector<2x24x32xf32> to vector<2x24xf32>
    %68 = vector.shape_cast %67 : vector<2x24xf32> to vector<2x24x1xf32>
    %cst_35 = arith.constant 3.200000e+01 : f32
    %69 = vector.broadcast %cst_35 : f32 to vector<2x24x1xf32>
    %70 = arith.divf %68, %69 : vector<2x24x1xf32>
    %71 = vector.broadcast %63 : vector<2x24x1xf32> to vector<2x24x32xf32>
    %72 = arith.subf %59, %71 : vector<2x24x32xf32>
    %cst_36 = arith.constant 9.99999974E-6 : f32
    %73 = vector.broadcast %cst_36 : f32 to vector<2x24x1xf32>
    %74 = arith.addf %70, %73 : vector<2x24x1xf32>
    %75 = math.rsqrt %74 : vector<2x24x1xf32>
    %76 = vector.broadcast %75 : vector<2x24x1xf32> to vector<2x24x32xf32>
    %77 = arith.mulf %72, %76 : vector<2x24x32xf32>
    %78 = vector.shape_cast %5 : vector<1x32xf32> to vector<1x1x32xf32>
    %79 = vector.broadcast %78 : vector<1x1x32xf32> to vector<2x24x32xf32>
    %80 = arith.mulf %77, %79 : vector<2x24x32xf32>
    %81 = vector.shape_cast %6 : vector<1x32xf32> to vector<1x1x32xf32>
    %82 = vector.broadcast %81 : vector<1x1x32xf32> to vector<2x24x32xf32>
    %83 = arith.addf %80, %82 : vector<2x24x32xf32>
    %c0_37 = arith.constant 0 : index
    %c0_38 = arith.constant 0 : index
    %84 = vector.load %arg9[%c0_37, %c0_38] : memref<32x64xf32, #tpu.memory_space<vmem>>, vector<32x64xf32>
    %cst_39 = arith.constant dense<0.000000e+00> : vector<2x24x64xf32>
    %85 = tpu.matmul %83, %84, %cst_39 {dimension_numbers = #tpu.dot_dimension_numbers<[2], [0], [0, 1], [1], [0, 0, 0, 1, 1, 1], [], []>} : vector<2x24x32xf32>, vector<32x64xf32>, vector<2x24x64xf32> -> vector<2x24x64xf32>
    %c0_40 = arith.constant 0 : index
    %c0_41 = arith.constant 0 : index
    %86 = vector.load %arg15[%c0_40, %c0_41] : memref<1x64xf32, #tpu.memory_space<vmem>>, vector<1x64xf32>
    %87 = vector.shape_cast %86 : vector<1x64xf32> to vector<1x1x64xf32>
    %88 = vector.broadcast %87 : vector<1x1x64xf32> to vector<2x24x64xf32>
    %89 = arith.addf %85, %88 : vector<2x24x64xf32>
    %cst_42 = arith.constant 0.000000e+00 : f32
    %90 = vector.broadcast %cst_42 : f32 to vector<2x24x64xf32>
    %91 = arith.maximumf %89, %90 : vector<2x24x64xf32>
    %c0_43 = arith.constant 0 : index
    %c0_44 = arith.constant 0 : index
    %92 = vector.load %arg10[%c0_43, %c0_44] : memref<64x32xf32, #tpu.memory_space<vmem>>, vector<64x32xf32>
    %cst_45 = arith.constant dense<0.000000e+00> : vector<2x24x32xf32>
    %93 = tpu.matmul %91, %92, %cst_45 {dimension_numbers = #tpu.dot_dimension_numbers<[2], [0], [0, 1], [1], [0, 0, 0, 1, 1, 1], [], []>} : vector<2x24x64xf32>, vector<64x32xf32>, vector<2x24x32xf32> -> vector<2x24x32xf32>
    %94 = arith.addf %83, %93 : vector<2x24x32xf32>
    %95 = vector.shape_cast %7 : vector<1x32xf32> to vector<1x1x32xf32>
    %96 = vector.broadcast %95 : vector<1x1x32xf32> to vector<2x24x32xf32>
    %97 = arith.addf %94, %96 : vector<2x24x32xf32>
    %cst_46 = arith.constant dense<0.000000e+00> : vector<2x24xf32>
    %98 = vector.multi_reduction <add>, %97, %cst_46 [2] : vector<2x24x32xf32> to vector<2x24xf32>
    %99 = vector.shape_cast %98 : vector<2x24xf32> to vector<2x24x1xf32>
    %cst_47 = arith.constant 3.200000e+01 : f32
    %100 = vector.broadcast %cst_47 : f32 to vector<2x24x1xf32>
    %101 = arith.divf %99, %100 : vector<2x24x1xf32>
    %102 = vector.broadcast %101 : vector<2x24x1xf32> to vector<2x24x32xf32>
    %103 = arith.subf %97, %102 : vector<2x24x32xf32>
    %104 = arith.mulf %103, %103 : vector<2x24x32xf32>
    %cst_48 = arith.constant dense<0.000000e+00> : vector<2x24xf32>
    %105 = vector.multi_reduction <add>, %104, %cst_48 [2] : vector<2x24x32xf32> to vector<2x24xf32>
    %106 = vector.shape_cast %105 : vector<2x24xf32> to vector<2x24x1xf32>
    %cst_49 = arith.constant 3.200000e+01 : f32
    %107 = vector.broadcast %cst_49 : f32 to vector<2x24x1xf32>
    %108 = arith.divf %106, %107 : vector<2x24x1xf32>
    %109 = vector.broadcast %101 : vector<2x24x1xf32> to vector<2x24x32xf32>
    %110 = arith.subf %97, %109 : vector<2x24x32xf32>
    %cst_50 = arith.constant 9.99999974E-6 : f32
    %111 = vector.broadcast %cst_50 : f32 to vector<2x24x1xf32>
    %112 = arith.addf %108, %111 : vector<2x24x1xf32>
    %113 = math.rsqrt %112 : vector<2x24x1xf32>
    %114 = vector.broadcast %113 : vector<2x24x1xf32> to vector<2x24x32xf32>
    %115 = arith.mulf %110, %114 : vector<2x24x32xf32>
    %116 = vector.shape_cast %8 : vector<1x32xf32> to vector<1x1x32xf32>
    %117 = vector.broadcast %116 : vector<1x1x32xf32> to vector<2x24x32xf32>
    %118 = arith.mulf %115, %117 : vector<2x24x32xf32>
    %119 = vector.shape_cast %9 : vector<1x32xf32> to vector<1x1x32xf32>
    %120 = vector.broadcast %119 : vector<1x1x32xf32> to vector<2x24x32xf32>
    %121 = arith.addf %118, %120 : vector<2x24x32xf32>
    %122 = vector.extract_strided_slice %121 {offsets = [0, 0, 0], sizes = [2, 1, 32], strides = [1, 1, 1]} : vector<2x24x32xf32> to vector<2x1x32xf32>
    %123 = vector.shape_cast %122 : vector<2x1x32xf32> to vector<2x32xf32>
    %c0_51 = arith.constant 0 : index
    %c0_52 = arith.constant 0 : index
    %124 = vector.load %arg11[%c0_51, %c0_52] : memref<32x128xf32, #tpu.memory_space<vmem>>, vector<32x128xf32>
    %cst_53 = arith.constant dense<0.000000e+00> : vector<2x128xf32>
    %125 = tpu.matmul %123, %124, %cst_53 {dimension_numbers = #tpu.dot_dimension_numbers<[1], [0], [0], [1], [0, 0, 1, 1], [], []>} : vector<2x32xf32>, vector<32x128xf32>, vector<2x128xf32> -> vector<2x128xf32>
    %c0_54 = arith.constant 0 : index
    %c0_55 = arith.constant 0 : index
    %126 = vector.load %arg16[%c0_54, %c0_55] : memref<1x128xf32, #tpu.memory_space<vmem>>, vector<1x128xf32>
    %127 = vector.broadcast %126 : vector<1x128xf32> to vector<2x128xf32>
    %128 = arith.addf %125, %127 : vector<2x128xf32>
    %129 = vector.extract_strided_slice %128 {offsets = [0, 32], sizes = [2, 1], strides = [1, 1]} : vector<2x128xf32> to vector<2x1xf32>
    %cst_56 = arith.constant 0.000000e+00 : f32
    %130 = vector.broadcast %cst_56 : f32 to vector<2x128xf32>
    %131 = arith.maximumf %128, %130 : vector<2x128xf32>
    %c0_57 = arith.constant 0 : index
    %c0_58 = arith.constant 0 : index
    %132 = vector.load %arg12[%c0_57, %c0_58] : memref<128x128xf32, #tpu.memory_space<vmem>>, vector<128x128xf32>
    %cst_59 = arith.constant dense<0.000000e+00> : vector<2x128xf32>
    %133 = tpu.matmul %131, %132, %cst_59 {dimension_numbers = #tpu.dot_dimension_numbers<[1], [0], [0], [1], [0, 0, 1, 1], [], []>} : vector<2x128xf32>, vector<128x128xf32>, vector<2x128xf32> -> vector<2x128xf32>
    %c0_60 = arith.constant 0 : index
    %c0_61 = arith.constant 0 : index
    %134 = vector.load %arg17[%c0_60, %c0_61] : memref<1x128xf32, #tpu.memory_space<vmem>>, vector<1x128xf32>
    %135 = vector.broadcast %134 : vector<1x128xf32> to vector<2x128xf32>
    %136 = arith.addf %133, %135 : vector<2x128xf32>
    %137 = arith.negf %136 : vector<2x128xf32>
    %138 = math.exp %137 : vector<2x128xf32>
    %cst_62 = arith.constant 1.000000e+00 : f32
    %139 = vector.broadcast %cst_62 : f32 to vector<2x128xf32>
    %140 = arith.addf %139, %138 : vector<2x128xf32>
    %141 = arith.divf %139, %140 : vector<2x128xf32>
    %142 = tpu.iota {dimensions = array<i32: 1>} : vector<2x128xi32>
    %c64_i32 = arith.constant 64 : i32
    %143 = vector.broadcast %c64_i32 : i32 to vector<2x128xi32>
    %144 = arith.cmpi slt, %142, %143 : vector<2x128xi32>
    %c64_i32_63 = arith.constant 64 : i32
    %145 = vector.broadcast %c64_i32_63 : i32 to vector<2x128xi32>
    %146 = arith.cmpi eq, %142, %145 : vector<2x128xi32>
    %147 = vector.shape_cast %129 : vector<2x1xf32> to vector<2x1xf32>
    %148 = vector.broadcast %147 : vector<2x1xf32> to vector<2x128xf32>
    %cst_64 = arith.constant 0.000000e+00 : f32
    %149 = vector.broadcast %cst_64 : f32 to vector<2x128xf32>
    %150 = arith.select %146, %148, %149 : vector<2x128xi1>, vector<2x128xf32>
    %151 = arith.select %144, %141, %150 : vector<2x128xi1>, vector<2x128xf32>
    %c0_65 = arith.constant 0 : index
    %c0_66 = arith.constant 0 : index
    %c0_67 = arith.constant 0 : index
    %152 = vector.load %arg18[%c0_65, %c0_66, %c0_67] : memref<1x2x128xf32, #tpu.memory_space<vmem>>, vector<1x2x128xf32>
    %153 = vector.shape_cast %152 : vector<1x2x128xf32> to vector<2x128xf32>
    %154 = vector.shape_cast %151 : vector<2x128xf32> to vector<1x2x128xf32>
    tpu.vector_store %arg18[%c0_65, %c0_66, %c0_67], %154 {strides = array<i32>} : memref<1x2x128xf32, #tpu.memory_space<vmem>>, vector<1x2x128xf32>,
    return
  }
  func.func @transform_0(%arg0: i32) -> (i32, i32, i32) {
    %c0_i32 = arith.constant 0 : i32
    %c0_i32_0 = arith.constant 0 : i32
    %c0_i32_1 = arith.constant 0 : i32
    return %arg0, %c0_i32, %c0_i32_0 : i32, i32, i32
  }
  func.func @transform_1(%arg0: i32) -> (i32, i32, i32) {
    %c0_i32 = arith.constant 0 : i32
    %c0_i32_0 = arith.constant 0 : i32
    %c0_i32_1 = arith.constant 0 : i32
    return %arg0, %c0_i32, %c0_i32_0 : i32, i32, i32
  }
  func.func @transform_2(%arg0: i32) -> (i32, i32, i32) {
    %c0_i32 = arith.constant 0 : i32
    %c0_i32_0 = arith.constant 0 : i32
    %c0_i32_1 = arith.constant 0 : i32
    return %arg0, %c0_i32, %c0_i32_0 : i32, i32, i32
  }
  func.func @transform_3(%arg0: i32) -> (i32, i32) {
    %c0_i32 = arith.constant 0 : i32
    %c0_i32_0 = arith.constant 0 : i32
    %c0_i32_1 = arith.constant 0 : i32
    return %c0_i32, %c0_i32_0 : i32, i32
  }
  func.func @transform_4(%arg0: i32) -> (i32, i32) {
    %c0_i32 = arith.constant 0 : i32
    %c0_i32_0 = arith.constant 0 : i32
    %c0_i32_1 = arith.constant 0 : i32
    return %c0_i32, %c0_i32_0 : i32, i32
  }
  func.func @transform_5(%arg0: i32) -> (i32, i32) {
    %c0_i32 = arith.constant 0 : i32
    %c0_i32_0 = arith.constant 0 : i32
    %c0_i32_1 = arith.constant 0 : i32
    return %c0_i32, %c0_i32_0 : i32, i32
  }
  func.func @transform_6(%arg0: i32) -> (i32, i32) {
    %c0_i32 = arith.constant 0 : i32
    %c0_i32_0 = arith.constant 0 : i32
    %c0_i32_1 = arith.constant 0 : i32
    return %c0_i32, %c0_i32_0 : i32, i32
  }
  func.func @transform_7(%arg0: i32) -> (i32, i32) {
    %c0_i32 = arith.constant 0 : i32
    %c0_i32_0 = arith.constant 0 : i32
    %c0_i32_1 = arith.constant 0 : i32
    return %c0_i32, %c0_i32_0 : i32, i32
  }
  func.func @transform_8(%arg0: i32) -> (i32, i32) {
    %c0_i32 = arith.constant 0 : i32
    %c0_i32_0 = arith.constant 0 : i32
    %c0_i32_1 = arith.constant 0 : i32
    return %c0_i32, %c0_i32_0 : i32, i32
  }
  func.func @transform_9(%arg0: i32) -> (i32, i32) {
    %c0_i32 = arith.constant 0 : i32
    %c0_i32_0 = arith.constant 0 : i32
    %c0_i32_1 = arith.constant 0 : i32
    return %c0_i32, %c0_i32_0 : i32, i32
  }
  func.func @transform_10(%arg0: i32) -> (i32, i32) {
    %c0_i32 = arith.constant 0 : i32
    %c0_i32_0 = arith.constant 0 : i32
    %c0_i32_1 = arith.constant 0 : i32
    return %c0_i32, %c0_i32_0 : i32, i32
  }
  func.func @transform_11(%arg0: i32) -> (i32, i32) {
    %c0_i32 = arith.constant 0 : i32
    %c0_i32_0 = arith.constant 0 : i32
    %c0_i32_1 = arith.constant 0 : i32
    return %c0_i32, %c0_i32_0 : i32, i32
  }
  func.func @transform_12(%arg0: i32) -> (i32, i32) {
    %c0_i32 = arith.constant 0 : i32
    %c0_i32_0 = arith.constant 0 : i32
    %c0_i32_1 = arith.constant 0 : i32
    return %c0_i32, %c0_i32_0 : i32, i32
  }
  func.func @transform_13(%arg0: i32) -> (i32, i32) {
    %c0_i32 = arith.constant 0 : i32
    %c0_i32_0 = arith.constant 0 : i32
    %c0_i32_1 = arith.constant 0 : i32
    return %c0_i32, %c0_i32_0 : i32, i32
  }
  func.func @transform_14(%arg0: i32) -> (i32, i32) {
    %c0_i32 = arith.constant 0 : i32
    %c0_i32_0 = arith.constant 0 : i32
    %c0_i32_1 = arith.constant 0 : i32
    return %c0_i32, %c0_i32_0 : i32, i32
  }
  func.func @transform_15(%arg0: i32) -> (i32, i32) {
    %c0_i32 = arith.constant 0 : i32
    %c0_i32_0 = arith.constant 0 : i32
    %c0_i32_1 = arith.constant 0 : i32
    return %c0_i32, %c0_i32_0 : i32, i32
  }
  func.func @transform_16(%arg0: i32) -> (i32, i32) {
    %c0_i32 = arith.constant 0 : i32
    %c0_i32_0 = arith.constant 0 : i32
    %c0_i32_1 = arith.constant 0 : i32
    return %c0_i32, %c0_i32_0 : i32, i32
  }
  func.func @transform_17(%arg0: i32) -> (i32, i32, i32) {
    %c0_i32 = arith.constant 0 : i32
    %c0_i32_0 = arith.constant 0 : i32
    %c0_i32_1 = arith.constant 0 : i32
    return %arg0, %c0_i32, %c0_i32_0 : i32, i32, i32
  }
}

</mosaic_0001>

<bundles_post_ra>
// kernel: multimodal_gazelle_forward.1
= control target key start
LH: loop header
LB: loop body
LE: loop exit
PB: predicated region body
PF: predicated region fallthrough
CT: control target
= control target key end

     0   :  { %vm66_vm0 = vcmask 130048   ;;  %vm157_vm1 = vcmask 195584   ;;  %vm249_vm2 = vcmask 261120   ;;  %v62_v25 = vlaneseq  ;;  %s2716_s3 = inlined_call_operand.vmem [shape: f32[16,32], index: 3, kind: input, shape index: {}]   ;;  %s2717_s4 = inlined_call_operand.vmem [shape: f32[24,32], index: 4, kind: input, shape index: {}]   ;;  %s2718_s0 = inlined_call_operand.vmem [shape: f32[2,8,16], index: 0, kind: input, shape index: {}]   ;;  %s2719_s5 = inlined_call_operand.vmem [shape: f32[32,32], index: 5, kind: input, shape index: {}]   ;;  %s2720_s1 = inlined_call_operand.vmem [shape: f32[2,8,24], index: 1, kind: input, shape index: {}]   ;;  %s2721_s2 = inlined_call_operand.vmem [shape: f32[2,8,32], index: 2, kind: input, shape index: {}]   ;;  %s2722_s6 = inlined_call_operand.vmem [shape: f32[32,96], index: 6, kind: input, shape index: {}]   ;;  %s2723_s12 = inlined_call_operand.vmem [shape: f32[9,32], index: 12, kind: input, shape index: {}]   ;;  %s2724_s13 = inlined_call_operand.vmem [shape: f32[1,96], index: 13, kind: input, shape index: {}]   ;;  %s2725_s7 = inlined_call_operand.vmem [shape: f32[32,32], index: 7, kind: input, shape index: {}]   ;;  %s2726_s8 = inlined_call_operand.vmem [shape: f32[32,64], index: 8, kind: input, shape index: {}]   ;;  %s2727_s9 = inlined_call_operand.vmem [shape: f32[64,32], index: 9, kind: input, shape index: {}]   ;;  %s2728_s14 = inlined_call_operand.vmem [shape: f32[1,64], index: 14, kind: input, shape index: {}]   ;;  %s2729_s10 = inlined_call_operand.vmem [shape: f32[32,128], index: 10, kind: input, shape index: {}]   ;;  %s2730_s11 = inlined_call_operand.vmem [shape: f32[128,128], index: 11, kind: input, shape index: {}]   ;;  %s2731_s15 = inlined_call_operand.vmem [shape: f32[1,128], index: 15, kind: input, shape index: {}]   ;;  %s2732_s16 = inlined_call_operand.vmem [shape: f32[1,128], index: 16, kind: input, shape index: {}]   ;;  %s2733_s17 = inlined_call_operand.vmem [shape: f32[1,2,128], index: 17, kind: output, shape index: {}]  }
   0x1   :  { %2736 = sst [smem:[#allocation2_spill]] %s2716_s3  ;;  %v58_v5 = vld [vmem:[%s2718_s0] sm:$0xff]  ;;  %v242_v8 = vld [vmem:[%s2719_s5 + $0x8] sm:$0xff]  ;;  %v243_v12 = vld [vmem:[%s2719_s5 + $0x10] sm:$0xff]  ;;  %v2191_v46 = vmov 0.0|0.0   ;;  %vm2193_vm3 = vmmov 0  }
   0x2   :  { %2737 = sst [smem:[#allocation3_spill]] %s2717_s4  ;;  %s2738_s26 = sld [smem:[#allocation2_spill]]  ;;  %1813 = vmatprep.mubr.msk.f32.mxu0 %vm66_vm0, %v58_v5  ;;  %v241_v7 = vld [vmem:[%s2719_s5] sm:$0xff]  ;;  %v59_v13 = vld [vmem:[%s2718_s0 + $0x8] sm:$0xff]  ;;  %v244_v14 = vld [vmem:[%s2719_s5 + $0x18] sm:$0xff]  ;;  %v2351_v26 = vshrl.u32 %v62_v25, 7 }
   0x3   :  { %s2739_s30 = sld [smem:[#allocation3_spill]]  ;;  %v2026_v10 = vpack.c.bf16 %v242_v8, %v241_v7  ;;  %v148_v11 = vld [vmem:[%s2720_s1] sm:$0xff]  ;;  %v2030_v15 = vpack.c.bf16 %v244_v14, %v243_v12  ;;  %v332_v18 = vld [vmem:[%s2722_s6 + $0x8] sm:$0xff]  ;;  %v333_v22 = vld [vmem:[%s2722_s6 + $0x10] sm:$0xff]  ;;  %s2192_s4 = smov 96   ;;  %v2194_v54 = vmov 0.0  }
   0x4   :  { %v239_v16 = vld [vmem:[%s2721_s2] sm:$0xff]  ;;  %1822 = vmatprep.mubr.msk.f32.mxu1 %vm157_vm1, %v148_v11  ;;  %v149_v20 = vld [vmem:[%s2720_s1 + $0x8] sm:$0xff]  ;;  %v334_v23 = vld [vmem:[%s2722_s6 + $0x18] sm:$0xff]  ;;  %v64_v27 = vsub.s32 0, %v2351_v26  ;;  %v155_v29 = vsub.s32 1, %v2351_v26  ;;  %v247_v35 = vsub.s32 2, %v2351_v26 }
   0x5   :  { %v331_v17 = vld [vmem:[%s2722_s6] sm:$0xff]  ;;  %v240_v21 = vld [vmem:[%s2721_s2 + $0x8] sm:$0xff]  ;;  %v2038_v24 = vpack.c.bf16 %v334_v23, %v333_v22  ;;  %vm2044_vm4 = vmpackc.low %vm249_vm2, %vm249_vm2  ;;  %vm1289_vm5 = vcmask 523264   ;;  %vm1459_vm6 = vcmask 1041409  }
   0x6   :  { %v2034_v19 = vpack.c.bf16 %v332_v18, %v331_v17  ;;  %v2357_v28 = vld [vmem:[%s2723_s12] sm:$0xff] }
   0x7   :  { %v65_v30 = vrot.slane %v2357_v28, %v64_v27  ;;  %v156_v33 = vrot.slane %v2357_v28, %v155_v29  ;;  %v248_v39 = vrot.slane %v2357_v28, %v247_v35  ;;  %v1655_v47 = vld [vmem:[%s2724_s13] ss:$0 sm:$0xff]  ;;  %s2195_s13 = smov 64  }
   0x8   :  { %v60_v0 = vld [vmem:[%s2738_s26] sm:$0xff]  ;;  %v61_v1 = vld [vmem:[%s2738_s26 + $0x8] sm:$0xff] }
   0x9   :  { %v150_v2 = vld [vmem:[%s2739_s30] sm:$0xff]  ;;  %v2018_v3 = vpack.c.bf16 %v61_v1, %v60_v0  ;;  %v151_v4 = vld [vmem:[%s2739_s30 + $0x8] sm:$0xff]  ;;  %v152_v9 = vld [vmem:[%s2739_s30 + $0x10] sm:$0xff] }
   0xa   :  { %v2022_v6 = vpack.c.bf16 %v151_v4, %v150_v2 }
   0xb   :  { %2019 = vmatprep.subr.bf16.mxu0 %v2018_v3 }
   0xc   :  { %2023 = vmatprep.subr.bf16.mxu1 %v2022_v6  ;;  %2021 = vmatpush3.bf16.msra.mxu0 %v2018_v3 }
   0xd   :  { %2025 = vmatpush3.bf16.msra.mxu1 %v2022_v6  ;;  %2027 = vmatprep.subr.bf16.mxu0 %v2026_v10 }
   0xe   :  { %1820 = vmatprep.subr.mxu1 %v152_v9 }
   0xf   :  { %1814 = vmatmul.mubr.msk.f32.vlgmr.msra.gmra.mrb[0].mxu0 %vm66_vm0, %v59_v13 }
  0x10   :  { %2029 = vmatpush3.bf16.msra.mxu0 %v2026_v10  ;;  %1833 = vmatprep.mubr.msk.f32.mxu0 %vm249_vm2, %v239_v16 }
  0x11   :  { %1821 = vmatpush3.msra.mxu1 %v152_v9  ;;  %2031 = vmatprep.subr.bf16.mxu0 %v2030_v15 }
  0x12   :  { %1823 = vmatmul.mubr.msk.f32.vlgmr.msra.gmra.mrb[0].mxu1 %vm157_vm1, %v149_v20  ;;  %2035 = vmatprep.subr.bf16.mxu1 %v2034_v19 }
  0x13   :  { %2037 = vmatpush3.bf16.msra.mxu1 %v2034_v19 }
  0x14   :  { %2033 = vmatpush3.bf16.msra.mxu0 %v2030_v15  ;;  %2039 = vmatprep.subr.bf16.mxu1 %v2038_v24 }
  0x15   :  { %2042 = vmatprep.subr.bf16.mxu0 %v2191_v46 }
  0x17   :  { %1834 = vmatmul.mubr.msk.f32.vlgmr.msra.gmra.mrb[2].mxu0 %vm249_vm2, %v240_v21  ;;  %2041 = vmatpush3.bf16.msra.mxu1 %v2038_v24 }
  0x18   :  { %2046 = vmatprep.subr.bf16.mxu1 %v2191_v46  ;;  %1859 = vmatprep.mubr.msk.f32.mxu0 %vm2193_vm3, %v2194_v54 }
  0xe2   :  { %v1815_v31 = vpop.f32.mrb[0].mxu0 }
  0xe3   :  { %v139_v32 = vpop.f32.mrb[1].mxu0  ;;  %v2374_v43 = vadd.f32 %v1815_v31, %v65_v30 }
  0xe4   :  { %v2362_v34 = vadd.f32 %v139_v32, %v65_v30 }
  0xe5   :  { %v1824_v36 = vpop.f32.mrb[0].mxu1 }
  0xe6   :  { %v230_v37 = vpop.f32.mrb[1].mxu1  ;;  %1844 = vmatprep.mubr.msk.f32.mxu1 %vm249_vm2, %v2362_v34  ;;  %v2376_v44 = vadd.f32 %v1824_v36, %v156_v33 }
  0xe7   :  { %v2367_v38 = vadd.f32 %v230_v37, %v156_v33 }
  0xe9   :  { %1845 = vmatmul.mubr.msk.f32.vlgmr.msra.gmra.mrb[2].mxu1 %vm249_vm2, %v2367_v38 }
  0xea   :  { %v1835_v40 = vpop.f32.mrb[2].mxu0 }
  0xeb   :  { %v322_v41 = vpop.f32.mrb[3].mxu0  ;;  %v2384_v45 = vadd.f32 %v1835_v40, %v248_v39 }
  0xec   :  { %v2372_v42 = vadd.f32 %v322_v41, %v248_v39 }
  0xee   :  { %1847 = vmatprep.mubr.msk.f32.mxu1 %vm249_vm2, %v2372_v42 }
  0xef   :  { %1848 = vmatmul.mubr.msk.f32.gmra.mrb[4].mxu1 %vm249_vm2, %v2374_v43 }
  0xf0   :  { %1850 = vmatprep.mubr.msk.f32.mxu1 %vm249_vm2, %v2376_v44 }
  0xf3   :  { %1851 = vmatmul.mubr.msk.f32.gmra.mrb[6].mxu1 %vm249_vm2, %v2384_v45 }
  0xf4   :  { %1874 = vmatprep.mubr.msk.f32.mxu1 %vm2193_vm3, %v2194_v54 }
 0x1bc   :  { %v1846_v48 = vpop.f32.mrb[2].mxu1 }
 0x1bd   :  { %v432_v49 = vadd.f32 %v1846_v48, %v1655_v47  ;;  %v426_v50 = vpop.f32.mrb[3].mxu1 }
 0x1be   :  { %v427_v51 = vadd.f32 %v1655_v47, %v426_v50 }
 0x1c0   :  { %v2393_v52 = vpack.i.bf16 %v432_v49, %v427_v51 }
 0x1c2   :  { %2125 = vrot.lane.b32.xlu0 %v2393_v52, %s2192_s4  ;;  %v1849_v53 = vpop.f32.mrb[4].mxu1 }
 0x1c3   :  { %v436_v55 = vpop.f32.mrb[5].mxu1  ;;  %v442_v60 = vadd.f32 %v1849_v53, %v1655_v47 }
 0x1c4   :  { %v2400_v56 = vadd.f32 %v1655_v47, %v436_v55 }
 0x1c6   :  { %v1852_v57 = vpop.f32.mrb[6].mxu1  ;;  %462 = vrot.lane.b32.xlu1 %v2400_v56, %s2192_s4 }
 0x1c7   :  { %v2403_v58 = vadd.f32 %v1852_v57, %v1655_v47  ;;  %v446_v59 = vpop.f32.mrb[7].mxu1 }
 0x1c8   :  { %v447_v61 = vadd.f32 %v1655_v47, %v446_v59 }
 0x1ca   :  { %563 = vrot.lane.b32.xlu1 %v2403_v58, %s2192_s4  ;;  %v2406_v62 = vpack.i.bf16 %v447_v61, %v442_v60 }
 0x1cc   :  { %2130 = vrot.lane.b32.xlu0 %v2406_v62, %s2192_s4 }
 0x234   :  { %v2126_v63 = vpop.permute.xlu0 %2125 }
 0x235   :  { %v2128_v0 = vunpack.i.h.bf16 %v2126_v63  ;;  %v2127_v1 = vunpack.i.l.bf16 %v2126_v63 }
 0x237   :  { %v2043_v2 = vpack.c.bf16 %v2128_v0, %v2127_v1 }
 0x238   :  { %v463_v6 = vpop.permute.xlu1 %462 }
 0x239   :  { %2045 = vmatpush3.bf16.xpose.msk.msra.mxu0 %vm2044_vm4, %v2043_v2 }
 0x23a   :  { %1857 = vmatprep.subr.mxu0 %v2194_v54 }
 0x23c   :  { %v564_v8 = vpop.permute.xlu1 %563 }
 0x23e   :  { %v2131_v3 = vpop.permute.xlu0 %2130 }
 0x23f   :  { %v2133_v4 = vunpack.i.h.bf16 %v2131_v3  ;;  %v2132_v5 = vunpack.i.l.bf16 %v2131_v3 }
 0x241   :  { %v2047_v7 = vpack.c.bf16 %v2133_v4, %v2132_v5  ;;  %1858 = vmatpush3.xpose.msk.msra.mxu0 %vm249_vm2, %v463_v6 }
 0x242   :  { %2050 = vmatprep.subr.bf16.mxu0 %v2191_v46 }
 0x243   :  { %2049 = vmatpush3.bf16.xpose.msk.msra.mxu1 %vm2044_vm4, %v2047_v7 }
 0x244   :  { %1860 = vmatmul.mubr.msk.f32.vlgmr.msra.gmra.mrb[4].mxu0 %vm249_vm2, %v427_v51  ;;  %1872 = vmatprep.subr.mxu1 %v2194_v54 }
 0x245   :  { %1862 = vmatprep.mubr.msk.f32.mxu0 %vm2193_vm3, %v2194_v54 }
 0x248   :  { %1863 = vmatmul.mubr.msk.f32.gmra.mrb[6].mxu0 %vm249_vm2, %v432_v49 }
 0x249   :  { %1865 = vmatprep.mubr.msk.f32.mxu0 %vm2193_vm3, %v2194_v54 }
 0x24b   :  { %1873 = vmatpush3.xpose.msk.msra.mxu1 %vm249_vm2, %v564_v8 }
 0x24c   :  { %1866 = vmatmul.mubr.msk.f32.gmra.mrb[8].mxu0 %vm249_vm2, %v2400_v56  ;;  %2053 = vmatprep.subr.bf16.mxu1 %v2191_v46 }
 0x24d   :  { %1889 = vmatprep.mubr.msk.f32.mxu0 %vm2193_vm3, %v2194_v54 }
 0x24e   :  { %1875 = vmatmul.mubr.msk.f32.vlgmr.msra.gmra.mrb[8].mxu1 %vm249_vm2, %v442_v60 }
 0x24f   :  { %1877 = vmatprep.mubr.msk.f32.mxu1 %vm2193_vm3, %v2194_v54 }
 0x252   :  { %1878 = vmatmul.mubr.msk.f32.gmra.mrb[10].mxu1 %vm249_vm2, %v447_v61 }
 0x253   :  { %1880 = vmatprep.mubr.msk.f32.mxu1 %vm2193_vm3, %v2194_v54 }
 0x256   :  { %1881 = vmatmul.mubr.msk.f32.gmra.mrb[12].mxu1 %vm249_vm2, %v2403_v58 }
 0x257   :  { %1904 = vmatprep.mubr.msk.f32.mxu1 %vm2193_vm3, %v2194_v54 }
 0x317   :  { %v542_v9 = vpop.f32.mrb[4].mxu0 }
 0x318   :  { %v657_v10 = vmul.f32 0.17677669, %v542_v9  ;;  %v1861_v11 = vpop.f32.mrb[5].mxu0 }
 0x31a   :  { %v663_v12 = vsel %vm157_vm1, %v657_v10, -inf }
 0x31b   :  { %664 = vmax.xlane.f32.xlu0 %v663_v12  ;;  %v547_v13 = vpop.f32.mrb[6].mxu0 }
 0x31c   :  { %v658_v14 = vmul.f32 0.17677669, %v547_v13  ;;  %v1864_v15 = vpop.f32.mrb[7].mxu0 }
 0x31e   :  { %v666_v16 = vsel %vm157_vm1, %v658_v14, -inf }
 0x31f   :  { %667 = vmax.xlane.f32.xlu1 %v666_v16  ;;  %v552_v17 = vpop.f32.mrb[8].mxu0 }
 0x320   :  { %v659_v18 = vmul.f32 0.17677669, %v552_v17  ;;  %v1867_v19 = vpop.f32.mrb[9].mxu0 }
 0x321   :  { %v643_v20 = vpop.f32.mrb[8].mxu1 }
 0x322   :  { %v660_v21 = vmul.f32 0.17677669, %v643_v20  ;;  %v1876_v22 = vpop.f32.mrb[9].mxu1  ;;  %v669_v23 = vsel %vm157_vm1, %v659_v18, -inf }
 0x323   :  { %670 = vmax.xlane.f32.xlu0 %v669_v23 }
 0x324   :  { %v672_v24 = vsel %vm157_vm1, %v660_v21, -inf }
 0x325   :  { %v648_v27 = vpop.f32.mrb[10].mxu1 }
 0x326   :  { %v1879_v29 = vpop.f32.mrb[11].mxu1  ;;  %v661_v3 = vmul.f32 0.17677669, %v648_v27 }
 0x327   :  { %673 = vmax.xlane.f32.xlu0 %v672_v24 }
 0x328   :  { %v675_v6 = vsel %vm157_vm1, %v661_v3, -inf }
 0x329   :  { %v653_v30 = vpop.f32.mrb[12].mxu1 }
 0x32a   :  { %v1882_v31 = vpop.f32.mrb[13].mxu1  ;;  %v662_v4 = vmul.f32 0.17677669, %v653_v30 }
 0x32c   :  { %v678_v5 = vsel %vm157_vm1, %v662_v4, -inf }
 0x330   :  { %2135 = vrot.lane.b32.xlu1 %v2393_v52, %s2195_s13 }
 0x3a8   :  { %v665_v32 = vpop.xlane.xlu0 %664 }
 0x3a9   :  { %v681_v33 = vsub.f32 %v657_v10, %v665_v32 }
 0x3ab   :  { %v687_v35 = vmul.f32 1.442695, %v681_v33 }
 0x3ac   :  { %v668_v36 = vpop.xlane.xlu1 %667 }
 0x3ad   :  { %2146 = vpow2.f32 %v687_v35  ;;  %v682_v37 = vsub.f32 %v658_v14, %v668_v36  ;;  %v925_v36 = vld [vmem:[%s2725_s7] sm:$0xff] }
 0x3af   :  { %v689_v39 = vmul.f32 1.442695, %v682_v37  ;;  %v926_v37 = vld [vmem:[%s2725_s7 + $0x8] sm:$0xff] }
 0x3b0   :  { %v2136_v40 = vpop.permute.xlu1 %2135  ;;  %v671_v41 = vpop.xlane.xlu0 %670 }
 0x3b1   :  { %2148 = vpow2.f32 %v689_v39  ;;  %v2138_v47 = vunpack.i.h.bf16 %v2136_v40  ;;  %v2137_v48 = vunpack.i.l.bf16 %v2136_v40  ;;  %v683_v49 = vsub.f32 %v659_v18, %v671_v41  ;;  %v927_v40 = vld [vmem:[%s2725_s7 + $0x10] sm:$0xff]  ;;  %v928_v41 = vld [vmem:[%s2725_s7 + $0x18] sm:$0xff] }
 0x3b2   :  { %v2056_v39 = vpack.c.bf16 %v926_v37, %v925_v36 }
 0x3b3   :  { %v2051_v50 = vpack.c.bf16 %v2138_v47, %v2137_v48  ;;  %v691_v51 = vmul.f32 1.442695, %v683_v49  ;;  %v2060_v47 = vpack.c.bf16 %v928_v41, %v927_v40 }
 0x3b4   :  { %v674_v53 = vpop.xlane.xlu0 %673 }
 0x3b5   :  { %2150 = vpow2.f32 %v691_v51  ;;  %v684_v55 = vsub.f32 %v660_v21, %v674_v53  ;;  %2052 = vmatpush3.bf16.msra.mxu0 %v2051_v50 }
 0x3b6   :  { %1887 = vmatprep.subr.mxu0 %v2194_v54 }
 0x3b7   :  { %v2147_v52 = vpop.eup %2146  ;;  %v693_v57 = vmul.f32 1.442695, %v684_v55 }
 0x3b8   :  { %v699_v59 = vsel %vm157_vm1, %v2147_v52, 0.0 }
 0x3b9   :  { %2152 = vpow2.f32 %v693_v57  ;;  %700 = vadd.xlane.f32.xlu1 %v699_v59 }
 0x3bb   :  { %v2149_v60 = vpop.eup %2148 }
 0x3bc   :  { %v702_v61 = vsel %vm157_vm1, %v2149_v60, 0.0 }
 0x3bd   :  { %703 = vadd.xlane.f32.xlu0 %v702_v61 }
 0x3bf   :  { %v2151_v63 = vpop.eup %2150 }
 0x3c0   :  { %v705_v0 = vsel %vm157_vm1, %v2151_v63, 0.0 }
 0x3c1   :  { %706 = vadd.xlane.f32.xlu1 %v705_v0 }
 0x3c3   :  { %v2153_v1 = vpop.eup %2152 }
 0x3c4   :  { %v708_v2 = vsel %vm157_vm1, %v2153_v1, 0.0 }
 0x3c5   :  { %709 = vadd.xlane.f32.xlu0 %v708_v2  ;;  %v931_v2 = vsub.s32 3, %v2351_v26 }
 0x3d2   :  { %2140 = vrot.lane.b32.xlu1 %v2406_v62, %s2195_s13 }
 0x3d6   :  { %831 = vrot.lane.b32.xlu1 %v2403_v58, %s2195_s13 }
 0x3db   :  { %733 = vrot.lane.b32.xlu0 %v2400_v56, %s2195_s13 }
 0x3fa   :  { %679 = vmax.xlane.f32.xlu1 %v678_v5  ;;  %676 = vmax.xlane.f32.xlu0 %v675_v6 }
 0x446   :  { %v701_v7 = vpop.xlane.xlu1 %700 }
 0x447   :  { %2154 = vrcp.f32 %v701_v7 }
 0x44a   :  { %v704_v8 = vpop.xlane.xlu0 %703 }
 0x44b   :  { %2156 = vrcp.f32 %v704_v8 }
 0x44e   :  { %v707_v9 = vpop.xlane.xlu1 %706 }
 0x44f   :  { %2158 = vrcp.f32 %v707_v9 }
 0x451   :  { %v2155_v58 = vpop.eup %2154 }
 0x452   :  { %v2141_v62 = vpop.permute.xlu1 %2140  ;;  %v710_v10 = vpop.xlane.xlu0 %709  ;;  %v723_v13 = vmul.f32 %v2155_v58, %v2147_v52 }
 0x453   :  { %v2143_v11 = vunpack.i.h.bf16 %v2141_v62  ;;  %v2142_v12 = vunpack.i.l.bf16 %v2141_v62  ;;  %2160 = vrcp.f32 %v710_v10 }
 0x455   :  { %v2054_v56 = vpack.c.bf16 %v2143_v11, %v2142_v12  ;;  %v2157_v15 = vpop.eup %2156 }
 0x456   :  { %v734_v14 = vpop.permute.xlu0 %733  ;;  %v832_v16 = vpop.permute.xlu1 %831  ;;  %v724_v17 = vmul.f32 %v2157_v15, %v2149_v60 }
 0x457   :  { %1888 = vmatpush3.msra.mxu0 %v734_v14  ;;  %2055 = vmatpush3.bf16.msra.mxu1 %v2054_v56 }
 0x458   :  { %1890 = vmatmul.mubr.msk.f32.vlgmr.msra.gmra.mrb[10].mxu0 %vm157_vm1, %v723_v13  ;;  %1902 = vmatprep.subr.mxu1 %v2194_v54 }
 0x459   :  { %1892 = vmatprep.mubr.msk.f32.mxu0 %vm2193_vm3, %v2194_v54  ;;  %v2159_v18 = vpop.eup %2158  ;;  %2057 = vmatprep.subr.bf16.mxu0 %v2056_v39 }
 0x45a   :  { %v725_v21 = vmul.f32 %v2159_v18, %v2151_v63  ;;  %2059 = vmatpush3.bf16.msra.mxu0 %v2056_v39 }
 0x45b   :  { %1903 = vmatpush3.msra.mxu1 %v832_v16  ;;  %2061 = vmatprep.subr.bf16.mxu0 %v2060_v47 }
 0x45c   :  { %1893 = vmatmul.mubr.msk.f32.gmra.mrb[12].mxu0 %vm157_vm1, %v724_v17 }
 0x45d   :  { %v2161_v19 = vpop.eup %2160  ;;  %1895 = vmatprep.mubr.msk.f32.mxu0 %vm2193_vm3, %v2194_v54 }
 0x45e   :  { %v726_v20 = vmul.f32 %v2161_v19, %v2153_v1  ;;  %2063 = vmatpush3.bf16.msra.mxu0 %v2060_v47  ;;  %v1151_v47 = vld [vmem:[%s2726_s8] sm:$0xff] }
 0x460   :  { %1896 = vmatmul.mubr.msk.f32.gmra.mrb[14].mxu0 %vm157_vm1, %v725_v21  ;;  %1905 = vmatmul.mubr.msk.f32.vlgmr.msra.gmra.mrb[14].mxu1 %vm157_vm1, %v726_v20 }
 0x461   :  { %1907 = vmatprep.mubr.msk.f32.mxu1 %vm2193_vm3, %v2194_v54 }
 0x487   :  { %v680_v22 = vpop.xlane.xlu1 %679  ;;  %v677_v23 = vpop.xlane.xlu0 %676 }
 0x488   :  { %v686_v24 = vsub.f32 %v662_v4, %v680_v22  ;;  %v685_v27 = vsub.f32 %v661_v3, %v677_v23  ;;  %v2491_v3 = vrot.slane %v2357_v28, %v931_v2 }
 0x48a   :  { %v695_v29 = vmul.f32 1.442695, %v685_v27  ;;  %v697_v30 = vmul.f32 1.442695, %v686_v24 }
 0x48c   :  { %2162 = vpow2.f32 %v695_v29 }
 0x48d   :  { %2164 = vpow2.f32 %v697_v30 }
 0x496   :  { %v2163_v31 = vpop.eup %2162 }
 0x497   :  { %v711_v32 = vsel %vm157_vm1, %v2163_v31, 0.0  ;;  %v2165_v33 = vpop.eup %2164 }
 0x498   :  { %712 = vadd.xlane.f32.xlu0 %v711_v32  ;;  %v714_v35 = vsel %vm157_vm1, %v2165_v33, 0.0 }
 0x49c   :  { %715 = vadd.xlane.f32.xlu0 %v714_v35 }
 0x525   :  { %v713_v48 = vpop.xlane.xlu0 %712 }
 0x526   :  { %2166 = vrcp.f32 %v713_v48  ;;  %v1152_v48 = vld [vmem:[%s2726_s8 + $0x8] sm:$0xff] }
 0x529   :  { %v716_v49 = vpop.xlane.xlu0 %715 }
 0x52a   :  { %2168 = vrcp.f32 %v716_v49  ;;  %v2064_v49 = vpack.c.bf16 %v1152_v48, %v1151_v47  ;;  %v1283_v47 = vld [vmem:[%s2727_s9 + $0x10] sm:$0xff]  ;;  %v1284_v48 = vld [vmem:[%s2727_s9 + $0x18] sm:$0xff] }
 0x52b   :  { %v813_v50 = vpop.f32.mrb[10].mxu0 }
 0x52c   :  { %v1891_v51 = vpop.f32.mrb[11].mxu0  ;;  %1921 = vmatprep.mubr.msk.f32.mxu0 %vm249_vm2, %v813_v50  ;;  %2065 = vmatprep.subr.bf16.mxu1 %v2064_v49  ;;  %v1153_v50 = vld [vmem:[%s2726_s8 + $0x10] sm:$0xff] }
 0x52d   :  { %2067 = vmatpush3.bf16.msra.mxu1 %v2064_v49  ;;  %v1154_v51 = vld [vmem:[%s2726_s8 + $0x18] sm:$0xff]  ;;  %v1285_v49 = vld [vmem:[%s2727_s9 + $0x20] sm:$0xff] }
 0x52f   :  { %v818_v53 = vpop.f32.mrb[12].mxu0 }
 0x530   :  { %v1894_v55 = vpop.f32.mrb[13].mxu0  ;;  %1922 = vmatmul.mubr.msk.f32.vlgmr.msra.gmra.mrb[16].mxu0 %vm249_vm2, %v818_v53  ;;  %v2167_v52 = vpop.eup %2166  ;;  %v2068_v53 = vpack.c.bf16 %v1154_v51, %v1153_v50  ;;  %v2076_v50 = vpack.c.bf16 %v1284_v48, %v1283_v47  ;;  %v1286_v51 = vld [vmem:[%s2727_s9 + $0x28] sm:$0xff] }
 0x531   :  { %v727_v57 = vmul.f32 %v2167_v52, %v2163_v31 }
 0x532   :  { %2069 = vmatprep.subr.bf16.mxu1 %v2068_v53 }
 0x533   :  { %v823_v59 = vpop.f32.mrb[14].mxu0  ;;  %v911_v60 = vpop.f32.mrb[14].mxu1  ;;  %1908 = vmatmul.mubr.msk.f32.gmra.mrb[16].mxu1 %vm157_vm1, %v727_v57 }
 0x534   :  { %v1897_v61 = vpop.f32.mrb[15].mxu0  ;;  %v1906_v63 = vpop.f32.mrb[15].mxu1  ;;  %1924 = vmatprep.mubr.msk.f32.mxu0 %vm249_vm2, %v823_v59  ;;  %1910 = vmatprep.mubr.msk.f32.mxu1 %vm2193_vm3, %v2194_v54 }
 0x535   :  { %v2169_v0 = vpop.eup %2168  ;;  %1925 = vmatmul.mubr.msk.f32.gmra.mrb[18].mxu0 %vm249_vm2, %v911_v60  ;;  %2071 = vmatpush3.bf16.msra.mxu1 %v2068_v53  ;;  %v2080_v53 = vpack.c.bf16 %v1286_v51, %v1285_v49  ;;  %v1446_v51 = vld [vmem:[%s2729_s10 + $0x8] sm:$0xff] }
 0x536   :  { %v728_v1 = vmul.f32 %v2169_v0, %v2165_v33  ;;  %2094 = vmatprep.subr.bf16.mxu1 %v2191_v46 }
 0x538   :  { %1911 = vmatmul.mubr.msk.f32.gmra.mrb[18].mxu1 %vm157_vm1, %v728_v1 }
 0x603   :  { %v1923_v4 = vpop.f32.mrb[16].mxu0 }
 0x604   :  { %v1023_v5 = vadd.f32 %v1923_v4, %v2491_v3  ;;  %v1017_v6 = vpop.f32.mrb[17].mxu0 }
 0x605   :  { %v1018_v7 = vadd.f32 %v1017_v6, %v2491_v3 }
 0x606   :  { %v1047_v8 = vadd.f32 %v1023_v5, %v2367_v38  ;;  %v916_v9 = vpop.f32.mrb[16].mxu1 }
 0x607   :  { %v1046_v62 = vadd.f32 %v1018_v7, %v2362_v34  ;;  %v1909_v10 = vpop.f32.mrb[17].mxu1  ;;  %1927 = vmatprep.mubr.msk.f32.mxu0 %vm249_vm2, %v916_v9 }
 0x608   :  { %v1926_v58 = vpop.f32.mrb[18].mxu0  ;;  %v1055_v11 = vsel %vm249_vm2, %v1047_v8, 0.0  ;;  %v1133_v10 = vsub.s32 4, %v2351_v26 }
 0x609   :  { %v1033_v12 = vadd.f32 %v1926_v58, %v2491_v3  ;;  %1056 = vadd.xlane.f32.xlu0 %v1055_v11  ;;  %v1027_v56 = vpop.f32.mrb[19].mxu0  ;;  %v1052_v13 = vsel %vm249_vm2, %v1046_v62, 0.0  ;;  %v1143_v58 = vsub.s32 5, %v2351_v26 }
 0x60a   :  { %v1028_v14 = vadd.f32 %v1027_v56, %v2491_v3  ;;  %1053 = vadd.xlane.f32.xlu1 %v1052_v13  ;;  %v2541_v11 = vrot.slane %v2357_v28, %v1133_v10 }
 0x60b   :  { %v921_v15 = vpop.f32.mrb[18].mxu1  ;;  %v1049_v38 = vadd.f32 %v1033_v12, %v2374_v43 }
 0x60c   :  { %v1912_v16 = vpop.f32.mrb[19].mxu1  ;;  %1928 = vmatmul.mubr.msk.f32.gmra.mrb[20].mxu0 %vm249_vm2, %v921_v15  ;;  %v1048_v34 = vadd.f32 %v1028_v14, %v2372_v42  ;;  %v2545_v14 = vrot.slane %v2357_v28, %v1143_v58 }
 0x60d   :  { %v1061_v17 = vsel %vm249_vm2, %v1049_v38, 0.0 }
 0x60e   :  { %1062 = vadd.xlane.f32.xlu0 %v1061_v17  ;;  %v1058_v18 = vsel %vm249_vm2, %v1048_v34, 0.0 }
 0x60f   :  { %1059 = vadd.xlane.f32.xlu1 %v1058_v18 }
 0x696   :  { %v1057_v19 = vpop.xlane.xlu0 %1056 }
 0x697   :  { %v1072_v20 = vmul.f32 0.03125, %v1057_v19  ;;  %v1054_v21 = vpop.xlane.xlu1 %1053 }
 0x698   :  { %v1071_v22 = vmul.f32 0.03125, %v1054_v21 }
 0x699   :  { %v2507_v23 = vsub.f32 %v1047_v8, %v1072_v20 }
 0x69a   :  { %v2509_v24 = vsub.f32 %v1046_v62, %v1071_v22 }
 0x69b   :  { %v1063_v43 = vpop.xlane.xlu0 %1062  ;;  %v1084_v27 = vmul.f32 %v2507_v23, %v2507_v23 }
 0x69c   :  { %v1074_v29 = vmul.f32 0.03125, %v1063_v43  ;;  %v1060_v42 = vpop.xlane.xlu1 %1059  ;;  %v1083_v30 = vmul.f32 %v2509_v24, %v2509_v24 }
 0x69d   :  { %v1073_v31 = vmul.f32 0.03125, %v1060_v42  ;;  %v1092_v32 = vsel %vm249_vm2, %v1084_v27, 0.0 }
 0x69e   :  { %v1080_v33 = vsub.f32 %v1049_v38, %v1074_v29  ;;  %1093 = vadd.xlane.f32.xlu0 %v1092_v32  ;;  %v1089_v35 = vsel %vm249_vm2, %v1083_v30, 0.0 }
 0x69f   :  { %v1079_v36 = vsub.f32 %v1048_v34, %v1073_v31  ;;  %1090 = vadd.xlane.f32.xlu1 %v1089_v35 }
 0x6a0   :  { %v1086_v37 = vmul.f32 %v1080_v33, %v1080_v33 }
 0x6a1   :  { %v1085_v39 = vmul.f32 %v1079_v36, %v1079_v36 }
 0x6a2   :  { %v1098_v40 = vsel %vm249_vm2, %v1086_v37, 0.0 }
 0x6a3   :  { %1099 = vadd.xlane.f32.xlu0 %v1098_v40  ;;  %v1095_v41 = vsel %vm249_vm2, %v1085_v39, 0.0  ;;  %v1281_v39 = vld [vmem:[%s2727_s9] sm:$0xff]  ;;  %v1282_v40 = vld [vmem:[%s2727_s9 + $0x8] sm:$0xff] }
 0x6a4   :  { %1096 = vadd.xlane.f32.xlu1 %v1095_v41  ;;  %v2072_v41 = vpack.c.bf16 %v1282_v40, %v1281_v39 }
 0x6a6   :  { %2073 = vmatprep.subr.bf16.mxu0 %v2072_v41 }
 0x6a7   :  { %2075 = vmatpush3.bf16.msra.mxu0 %v2072_v41 }
 0x6a8   :  { %2077 = vmatprep.subr.bf16.mxu0 %v2076_v50 }
 0x6ab   :  { %2079 = vmatpush3.bf16.msra.mxu0 %v2076_v50  ;;  %v1445_v50 = vld [vmem:[%s2729_s10] sm:$0xff] }
 0x6ac   :  { %2081 = vmatprep.subr.bf16.mxu0 %v2080_v53 }
 0x6af   :  { %2083 = vmatpush3.bf16.msra.mxu0 %v2080_v53  ;;  %v2089_v53 = vpack.c.bf16 %v1446_v51, %v1445_v50 }
 0x6df   :  { %v1929_v55 = vpop.f32.mrb[20].mxu0 }
 0x6e0   :  { %v1043_v52 = vadd.f32 %v1929_v55, %v2491_v3  ;;  %v1037_v57 = vpop.f32.mrb[21].mxu0  ;;  %v1287_v55 = vld [vmem:[%s2727_s9 + $0x30] sm:$0xff] }
 0x6e1   :  { %v1038_v59 = vadd.f32 %v1037_v57, %v2491_v3 }
 0x6e2   :  { %v1051_v60 = vadd.f32 %v1043_v52, %v2384_v45  ;;  %v1288_v52 = vld [vmem:[%s2727_s9 + $0x38] sm:$0xff] }
 0x6e3   :  { %v1050_v61 = vadd.f32 %v1038_v59, %v2376_v44  ;;  %v2084_v57 = vpack.c.bf16 %v1288_v52, %v1287_v55  ;;  %v1447_v55 = vld [vmem:[%s2729_s10 + $0x10] sm:$0xff]  ;;  %v1448_v52 = vld [vmem:[%s2729_s10 + $0x18] sm:$0xff] }
 0x6e4   :  { %v1067_v63 = vsel %vm249_vm2, %v1051_v60, 0.0 }
 0x6e5   :  { %1068 = vadd.xlane.f32.xlu0 %v1067_v63  ;;  %v1064_v0 = vsel %vm249_vm2, %v1050_v61, 0.0  ;;  %2085 = vmatprep.subr.bf16.mxu0 %v2084_v57 }
 0x6e6   :  { %1065 = vadd.xlane.f32.xlu1 %v1064_v0  ;;  %2087 = vmatpush3.bf16.msra.mxu0 %v2084_v57  ;;  %v2092_v57 = vpack.c.bf16 %v1448_v52, %v1447_v55 }
 0x6e7   :  { %2088 = vmatprep.subr.bf16.mxu0 %v2191_v46 }
 0x72b   :  { %v1094_v1 = vpop.xlane.xlu0 %1093 }
 0x72c   :  { %v1108_v2 = vmul.f32 0.03125, %v1094_v1  ;;  %v1091_v4 = vpop.xlane.xlu1 %1090 }
 0x72d   :  { %v1107_v5 = vmul.f32 0.03125, %v1091_v4 }
 0x72e   :  { %v1114_v6 = vadd.f32 1e-05, %v1108_v2  ;;  %v1686_v2 = vld [vmem:[%s2728_s14] ss:$0 sm:$0xff] }
 0x72f   :  { %v1113_v7 = vadd.f32 1e-05, %v1107_v5 }
 0x730   :  { %2170 = vrsqrt.f32 %v1114_v6  ;;  %v1100_v8 = vpop.xlane.xlu0 %1099 }
 0x731   :  { %2172 = vrsqrt.f32 %v1113_v7  ;;  %v1110_v3 = vmul.f32 0.03125, %v1100_v8  ;;  %v1097_v9 = vpop.xlane.xlu1 %1096 }
 0x732   :  { %v1109_v45 = vmul.f32 0.03125, %v1097_v9 }
 0x733   :  { %v1116_v62 = vadd.f32 1e-05, %v1110_v3 }
 0x734   :  { %v1115_v44 = vadd.f32 1e-05, %v1109_v45 }
 0x735   :  { %2174 = vrsqrt.f32 %v1116_v62 }
 0x736   :  { %2176 = vrsqrt.f32 %v1115_v44 }
 0x73a   :  { %v2171_v12 = vpop.eup %2170 }
 0x73b   :  { %v2173_v56 = vpop.eup %2172  ;;  %v1126_v13 = vmul.f32 %v2171_v12, %v2507_v23 }
 0x73c   :  { %v1125_v15 = vmul.f32 %v2173_v56, %v2509_v24 }
 0x73d   :  { %v1136_v38 = vmul.f32 %v2541_v11, %v1126_v13 }
 0x73e   :  { %v1135_v16 = vmul.f32 %v2541_v11, %v1125_v15 }
 0x73f   :  { %v2175_v34 = vpop.eup %2174  ;;  %v1146_v20 = vadd.f32 %v2545_v14, %v1136_v38 }
 0x740   :  { %v2177_v17 = vpop.eup %2176  ;;  %v2551_v18 = vadd.f32 %v2545_v14, %v1135_v16  ;;  %v1128_v19 = vmul.f32 %v2175_v34, %v1080_v33 }
 0x741   :  { %v1127_v21 = vmul.f32 %v2177_v17, %v1079_v36 }
 0x742   :  { %1938 = vmatprep.mubr.msk.f32.mxu1 %vm249_vm2, %v2551_v18  ;;  %v1138_v22 = vmul.f32 %v2541_v11, %v1128_v19 }
 0x743   :  { %1939 = vmatmul.mubr.msk.f32.vlgmr.msra.gmra.mrb[20].mxu1 %vm249_vm2, %v1146_v20  ;;  %v1137_v23 = vmul.f32 %v2541_v11, %v1127_v21 }
 0x744   :  { %v2561_v43 = vadd.f32 %v2545_v14, %v1138_v22 }
 0x745   :  { %v1147_v24 = vadd.f32 %v2545_v14, %v1137_v23 }
 0x747   :  { %1941 = vmatprep.mubr.msk.f32.mxu1 %vm249_vm2, %v1147_v24 }
 0x748   :  { %1942 = vmatmul.mubr.msk.f32.gmra.mrb[22].mxu1 %vm249_vm2, %v2561_v43 }
 0x772   :  { %v1069_v27 = vpop.xlane.xlu0 %1068 }
 0x773   :  { %v1076_v29 = vmul.f32 0.03125, %v1069_v27  ;;  %v1066_v42 = vpop.xlane.xlu1 %1065 }
 0x774   :  { %v1075_v30 = vmul.f32 0.03125, %v1066_v42 }
 0x775   :  { %v1082_v31 = vsub.f32 %v1051_v60, %v1076_v29 }
 0x776   :  { %v1081_v32 = vsub.f32 %v1050_v61, %v1075_v30 }
 0x777   :  { %v1088_v33 = vmul.f32 %v1082_v31, %v1082_v31 }
 0x778   :  { %v1087_v35 = vmul.f32 %v1081_v32, %v1081_v32 }
 0x779   :  { %v1104_v36 = vsel %vm249_vm2, %v1088_v33, 0.0 }
 0x77a   :  { %1105 = vadd.xlane.f32.xlu0 %v1104_v36  ;;  %v1101_v37 = vsel %vm249_vm2, %v1087_v35, 0.0 }
 0x77b   :  { %1102 = vadd.xlane.f32.xlu1 %v1101_v37 }
 0x807   :  { %v1106_v59 = vpop.xlane.xlu0 %1105 }
 0x808   :  { %v1112_v60 = vmul.f32 0.03125, %v1106_v59  ;;  %v1103_v61 = vpop.xlane.xlu1 %1102  ;;  %v1534_v59 = vld [vmem:[%s2730_s11] sm:$0xff] }
 0x809   :  { %v1111_v63 = vmul.f32 0.03125, %v1103_v61  ;;  %v1536_v61 = vld [vmem:[%s2730_s11 + $0x10] sm:$0xff] }
 0x80a   :  { %v1118_v0 = vadd.f32 1e-05, %v1112_v60  ;;  %v1535_v60 = vld [vmem:[%s2730_s11 + $0x8] sm:$0xff] }
 0x80b   :  { %v1117_v1 = vadd.f32 1e-05, %v1111_v63  ;;  %v2095_v63 = vpack.c.bf16 %v1535_v60, %v1534_v59 }
 0x80c   :  { %2178 = vrsqrt.f32 %v1118_v0  ;;  %v1537_v0 = vld [vmem:[%s2730_s11 + $0x18] sm:$0xff] }
 0x80d   :  { %2180 = vrsqrt.f32 %v1117_v1  ;;  %2096 = vmatpush3.bf16.msra.mxu1 %v2095_v63  ;;  %v2098_v1 = vpack.c.bf16 %v1537_v0, %v1536_v61 }
 0x80e   :  { %2097 = vmatprep.subr.bf16.mxu1 %v2191_v46 }
 0x811   :  { %2099 = vmatpush3.bf16.msra.mxu1 %v2098_v1 }
 0x812   :  { %2100 = vmatprep.subr.bf16.mxu1 %v2191_v46 }
 0x816   :  { %v2179_v4 = vpop.eup %2178  ;;  %v1940_v5 = vpop.f32.mrb[20].mxu1 }
 0x817   :  { %v2181_v6 = vpop.eup %2180  ;;  %v1252_v7 = vadd.f32 %v1940_v5, %v1686_v2  ;;  %v1246_v8 = vpop.f32.mrb[21].mxu1  ;;  %v1130_v3 = vmul.f32 %v2179_v4, %v1082_v31  ;;  %v1539_v4 = vld [vmem:[%s2730_s11 + $0x28] sm:$0xff] }
 0x818   :  { %v1247_v9 = vadd.f32 %v1686_v2, %v1246_v8  ;;  %v1129_v45 = vmul.f32 %v2181_v6, %v1081_v32  ;;  %v1540_v6 = vld [vmem:[%s2730_s11 + $0x30] sm:$0xff] }
 0x819   :  { %v1140_v62 = vmul.f32 %v2541_v11, %v1130_v3  ;;  %v1276_v58 = vmax.f32 %v1252_v7, 0.0  ;;  %v1541_v7 = vld [vmem:[%s2730_s11 + $0x38] sm:$0xff]  ;;  %v1542_v3 = vld [vmem:[%s2730_s11 + $0x40] sm:$0xff] }
 0x81a   :  { %v1275_v44 = vmax.f32 %v1247_v9, 0.0  ;;  %v1139_v10 = vmul.f32 %v2541_v11, %v1129_v45  ;;  %v1403_v11 = vsub.s32 6, %v2351_v26  ;;  %v2104_v8 = vpack.c.bf16 %v1541_v7, %v1540_v6  ;;  %v1543_v9 = vld [vmem:[%s2730_s11 + $0x48] sm:$0xff] }
 0x81b   :  { %v1943_v12 = vpop.f32.mrb[22].mxu1  ;;  %v1150_v16 = vadd.f32 %v2545_v14, %v1140_v62  ;;  %v2107_v45 = vpack.c.bf16 %v1543_v9, %v1542_v3  ;;  %v1544_v62 = vld [vmem:[%s2730_s11 + $0x50] sm:$0xff] }
 0x81c   :  { %v1262_v56 = vadd.f32 %v1943_v12, %v1686_v2  ;;  %v1256_v13 = vpop.f32.mrb[23].mxu1  ;;  %1963 = vmatprep.mubr.msk.f32.mxu0 %vm1289_vm5, %v1275_v44  ;;  %v1149_v15 = vadd.f32 %v2545_v14, %v1139_v10  ;;  %v1404_v20 = vrot.slane %v2357_v28, %v1403_v11  ;;  %v1545_v44 = vld [vmem:[%s2730_s11 + $0x58] sm:$0xff]  ;;  %v1547_v12 = vld [vmem:[%s2730_s11 + $0x68] sm:$0xff] }
 0x81d   :  { %v1257_v38 = vadd.f32 %v1686_v2, %v1256_v13  ;;  %1964 = vmatmul.mubr.msk.f32.vlgmr.msra.gmra.mrb[22].mxu0 %vm1289_vm5, %v1276_v58  ;;  %v2110_v10 = vpack.c.bf16 %v1545_v44, %v1544_v62  ;;  %v1546_v58 = vld [vmem:[%s2730_s11 + $0x60] sm:$0xff] }
 0x81e   :  { %1944 = vmatprep.mubr.msk.f32.mxu1 %vm249_vm2, %v1149_v15  ;;  %v1278_v17 = vmax.f32 %v1262_v56, 0.0  ;;  %2090 = vmatpush3.bf16.msra.mxu0 %v2089_v53  ;;  %v2113_v15 = vpack.c.bf16 %v1547_v12, %v1546_v58  ;;  %v1634_v53 = vand.u32 127, %v62_v25 }
 0x81f   :  { %v1277_v34 = vmax.f32 %v1257_v38, 0.0  ;;  %1945 = vmatmul.mubr.msk.f32.gmra.mrb[24].mxu1 %vm249_vm2, %v1150_v16  ;;  %2091 = vmatprep.subr.bf16.mxu0 %v2191_v46 }
 0x820   :  { %2015 = vmatprep.mubr.msk.f32.mxu1 %vm2193_vm3, %v2194_v54  ;;  %vm1636_vm7 = vcmp.eq.s32.totalorder %v1634_v53, 64  ;;  %vm1635_vm8 = vcmp.lt.s32.totalorder %v1634_v53, 64 }
 0x821   :  { %1966 = vmatprep.mubr.msk.f32.mxu0 %vm1289_vm5, %v1277_v34 }
 0x822   :  { %1967 = vmatmul.mubr.msk.f32.gmra.mrb[24].mxu0 %vm1289_vm5, %v1278_v17 }
 0x823   :  { %2093 = vmatpush3.bf16.msra.mxu0 %v2092_v57 }
 0x8f0   :  { %v1965_v19 = vpop.f32.mrb[22].mxu0 }
 0x8f1   :  { %v1374_v21 = vpop.f32.mrb[23].mxu0 }
 0x8f2   :  { %v1946_v14 = vpop.f32.mrb[24].mxu1  ;;  %v1399_v22 = vadd.f32 %v1374_v21, %v2551_v18 }
 0x8f3   :  { %v1272_v23 = vadd.f32 %v1946_v14, %v1686_v2  ;;  %v1266_v24 = vpop.f32.mrb[25].mxu1  ;;  %v2190_v14 = vld [vmem:[%s2723_s12] sm:$0xff] }
 0x8f4   :  { %v1267_v27 = vadd.f32 %v1686_v2, %v1266_v24  ;;  %v1405_v29 = vadd.f32 %v1404_v20, %v1399_v22  ;;  %v1538_v2 = vld [vmem:[%s2730_s11 + $0x20] sm:$0xff] }
 0x8f5   :  { %v1968_v42 = vpop.f32.mrb[24].mxu0  ;;  %v1280_v35 = vmax.f32 %v1272_v23, 0.0  ;;  %v2101_v5 = vpack.c.bf16 %v1539_v4, %v1538_v2 }
 0x8f6   :  { %v1279_v30 = vmax.f32 %v1267_v27, 0.0  ;;  %v1400_v31 = vadd.f32 %v1968_v42, %v2561_v43  ;;  %v1383_v32 = vpop.f32.mrb[25].mxu0  ;;  %v1407_v33 = vsel %vm249_vm2, %v1405_v29, 0.0  ;;  %v1699_v42 = vld [vmem:[%s2723_s12 + $0x8] ss:$0 sm:$0xff] }
 0x8f7   :  { %1408 = vadd.xlane.f32.xlu0 %v1407_v33  ;;  %2102 = vmatpush3.bf16.msra.mxu1 %v2101_v5  ;;  %v1548_v33 = vld [vmem:[%s2730_s11 + $0x70] sm:$0xff] }
 0x8f8   :  { %1969 = vmatprep.mubr.msk.f32.mxu0 %vm1289_vm5, %v1279_v30  ;;  %v1406_v28 = vadd.f32 %v1404_v20, %v1400_v31  ;;  %2103 = vmatprep.subr.bf16.mxu1 %v2191_v46  ;;  %v1435_v20 = vsub.s32 7, %v2351_v26 }
 0x8f9   :  { %1970 = vmatmul.mubr.msk.f32.gmra.mrb[26].mxu0 %vm1289_vm5, %v1280_v35  ;;  %v1549_v35 = vld [vmem:[%s2730_s11 + $0x78] sm:$0xff] }
 0x8fa   :  { %v1410_v18 = vsel %vm249_vm2, %v1406_v28, 0.0  ;;  %1980 = vmatprep.mubr.msk.f32.mxu0 %vm2193_vm3, %v2194_v54  ;;  %v1436_v22 = vrot.slane %v2190_v14, %v1435_v20 }
 0x8fb   :  { %1411 = vadd.xlane.f32.xlu1 %v1410_v18  ;;  %2105 = vmatpush3.bf16.msra.mxu1 %v2104_v8  ;;  %v2196_v18 = vmov 32  }
 0x8fc   :  { %2106 = vmatprep.subr.bf16.mxu1 %v2191_v46  ;;  %2144 = vset.pattern.permute.xlu1 %v2196_v18 }
 0x8fd   :  { %2145 = vset.pattern.permute.xlu0 %v2196_v18 }
 0x8ff   :  { %2108 = vmatpush3.bf16.msra.mxu1 %v2107_v45 }
 0x900   :  { %2109 = vmatprep.subr.bf16.mxu1 %v2191_v46 }
 0x903   :  { %2111 = vmatpush3.bf16.msra.mxu1 %v2110_v10 }
 0x904   :  { %2112 = vmatprep.subr.bf16.mxu1 %v2191_v46 }
 0x907   :  { %2114 = vmatpush3.bf16.msra.mxu1 %v2113_v15 }
 0x908   :  { %2115 = vmatprep.subr.bf16.mxu1 %v2191_v46 }
 0x984   :  { %v1409_v36 = vpop.xlane.xlu0 %1408 }
 0x985   :  { %v1413_v37 = vmul.f32 0.03125, %v1409_v36  ;;  %v1700_v36 = vld [vmem:[%s2731_s15] ss:$0 sm:$0xff] }
 0x987   :  { %v2618_v39 = vsub.f32 %v1405_v29, %v1413_v37 }
 0x988   :  { %v1412_v43 = vpop.xlane.xlu1 %1411 }
 0x989   :  { %v1414_v40 = vmul.f32 0.03125, %v1412_v43  ;;  %v1417_v41 = vmul.f32 %v2618_v39, %v2618_v39 }
 0x98b   :  { %v2622_v47 = vsub.f32 %v1406_v28, %v1414_v40  ;;  %v1419_v48 = vsel %vm249_vm2, %v1417_v41, 0.0  ;;  %v2116_v28 = vpack.c.bf16 %v1549_v35, %v1548_v33  ;;  %v1702_v41 = vld [vmem:[%s2732_s16] ss:$0 sm:$0xff] }
 0x98c   :  { %1420 = vadd.xlane.f32.xlu0 %v1419_v48 }
 0x98d   :  { %v1418_v49 = vmul.f32 %v2622_v47, %v2622_v47  ;;  %2117 = vmatpush3.bf16.msra.mxu1 %v2116_v28 }
 0x98f   :  { %v1422_v54 = vsel %vm249_vm2, %v1418_v49, 0.0 }
 0x990   :  { %1423 = vadd.xlane.f32.xlu1 %v1422_v54 }
 0x9cc   :  { %v1971_v56 = vpop.f32.mrb[26].mxu0 }
 0x9cd   :  { %v1392_v13 = vpop.f32.mrb[27].mxu0 }
 0xa19   :  { %v1421_v38 = vpop.xlane.xlu0 %1420 }
 0xa1a   :  { %v1425_v16 = vmul.f32 0.03125, %v1421_v38 }
 0xa1c   :  { %v1427_v34 = vadd.f32 1e-05, %v1425_v16 }
 0xa1d   :  { %v1424_v17 = vpop.xlane.xlu1 %1423 }
 0xa1e   :  { %2182 = vrsqrt.f32 %v1427_v34  ;;  %v1426_v11 = vmul.f32 0.03125, %v1424_v17 }
 0xa20   :  { %v1428_v19 = vadd.f32 1e-05, %v1426_v11 }
 0xa22   :  { %2184 = vrsqrt.f32 %v1428_v19 }
 0xa28   :  { %v2183_v21 = vpop.eup %2182 }
 0xa29   :  { %v1431_v23 = vmul.f32 %v2183_v21, %v2618_v39 }
 0xa2b   :  { %v1437_v27 = vmul.f32 %v1436_v22, %v1431_v23 }
 0xa2c   :  { %v2185_v24 = vpop.eup %2184 }
 0xa2d   :  { %v1432_v46 = vmul.f32 %v2185_v24, %v2622_v47  ;;  %v1443_v26 = vadd.f32 %v1699_v42, %v1437_v27 }
 0xa2f   :  { %v1438_v29 = vmul.f32 %v1436_v22, %v1432_v46 }
 0xa31   :  { %v1444_v30 = vadd.f32 %v1699_v42, %v1438_v29 }
 0xa33   :  { %v1458_v31 = vrot.slane %v1444_v30, 7 }
 0xa35   :  { %v1460_v32 = vsel %vm1459_vm6, %v1458_v31, %v1443_v26 }
 0xa36   :  { %1981 = vmatmul.mubr.msk.f32.vlgmr.msra.gmra.mrb[28].mxu0 %vm249_vm2, %v1460_v32 }
 0xb09   :  { %v1529_v37 = vpop.f32.mrb[28].mxu0 }
 0xb0a   :  { %v1530_v39 = vadd.f32 %v1700_v36, %v1529_v37  ;;  %v1982_v43 = vpop.f32.mrb[29].mxu0 }
 0xb0c   :  { %v1533_v40 = vmax.f32 %v1530_v39, 0.0  ;;  %1639 = vperm.xlu1 %2144, %v1530_v39  }
 0xb0e   :  { %2016 = vmatmul.mubr.f32.vlgmr.msra.gmra.mrb[26].mxu1 %v1533_v40 }
 0xb8b   :  { %v1640_v55 = vpop.permute.xlu1 %1639 }
 0xb8c   :  { %v1642_v57 = vsel %vm1636_vm7, %v1640_v55, 0.0 }
 0xbe1   :  { %v1623_v47 = vpop.f32.mrb[26].mxu1 }
 0xbe2   :  { %v1624_v48 = vadd.f32 %v1702_v41, %v1623_v47  ;;  %v2017_v49 = vpop.f32.mrb[27].mxu1 }
 0xbe4   :  { %v1703_v54 = vmul.f32 -1.442695, %v1624_v48 }
 0xbe6   :  { %2186 = vpow2.f32 %v1703_v54 }
 0xbf0   :  { %v2187_v50 = vpop.eup %2186 }
 0xbf1   :  { %v1630_v51 = vadd.f32 1.0, %v2187_v50 }
 0xbf3   :  { %2188 = vrcp.f32 %v1630_v51 }
 0xbfd   :  { %v2189_v52 = vpop.eup %2188 }
 0xbfe   :  { %v1643_v59 = vsel %vm1635_vm8, %v2189_v52, %v1642_v57 }
 0xbff   :  { %1644 = vst [vmem:[%s2733_s17] sm:$0x3] %v1643_v59 }

</bundles_post_ra>
